<compile_context>
chip_gen: v7x
topology: tpu7x:2x2x1
jax: 0.10.0
libtpu: 0.0.40
codegen_flags: <defaults>
</compile_context>

<pallas_src>
import functools
import math

import jax
import jax.numpy as jnp
import numpy as np
from jax.experimental import pallas as pl
from jax.experimental.pallas import tpu as pltpu

EPS = 1e-5
MXU_DTYPE = jnp.bfloat16      # matmul operand dtype (accumulation is always f32)


# --------------------------------- Pallas kernel ---------------------------------

def _repvit_block_kernel(x_ref, dww_ref, dwb_ref, w1_ref, b1_ref,
                         w2_ref, b2_ref, o_ref, *, C):
    """One image per grid step, lane-dense (H, W*C) layout (lanes = w*C + c).

    x_ref  : (H, W*C)      f32 activations for one image
    dww_ref: (9, H, W*C)   fused depthwise 3x3 weights, pre-broadcast over rows,
                           tiled over W, W-boundary lanes zeroed
    dwb_ref: (1, W*C)      fused depthwise bias (absorbs both BNs + dw1x1 bias)
    w1_ref : (W*C, W*2C)   block-diagonal fused 1x1+BN  (C -> 2C per token)   [bf16]
    b1_ref : (1, W*2C)
    w2_ref : (W*2C, W*C)   block-diagonal fused 1x1+BN  (2C -> C per token)   [bf16]
    b2_ref : (1, W*C)
    o_ref  : (H, W*C)
    """
    H, WC = x_ref.shape

    x = x_ref[...].astype(jnp.float32)                      # (H, W*C)

    # H-boundary row masks computed in-kernel (no DMA'd mask input).
    hh = jax.lax.broadcasted_iota(jnp.int32, (H, 1), 0)
    rm_up = (hh > 0).astype(jnp.float32)                    # valid to read h-1
    rm_dn = (hh < H - 1).astype(jnp.float32)                # valid to read h+1

    # ---- token mixer: fused RepVGGDW (dw3x3 + dw1x1 + identity, BNs folded) ----
    # out[h, w] = sum_{dh,dw} x[h+dh, w+dw] * K[dh+1, dw+1]  with zero padding.
    # Row shifts  -> sublane roll (wraps within THIS image) + row mask (H boundary).
    # Col shifts  -> lane roll by C; wrap garbage is killed by zeroed boundary weights.
    # dww_ref[k] is a full (H, W*C) slab -> plain vld, no sublane broadcast on the XLU.
    acc = x * dww_ref[4]                                    # center tap (kh=1, kw=1)
    for dh in (-1, 0, 1):
        if dh == 0:
            xh = x
        else:
            xh = pltpu.roll(x, shift=(-dh) % H, axis=0)
            xh = xh * (rm_up if dh == -1 else rm_dn)
        for dw in (-1, 0, 1):
            if dh == 0 and dw == 0:
                continue
            v = xh if dw == 0 else pltpu.roll(xh, shift=(-dw * C) % WC, axis=1)
            k = (dh + 1) * 3 + (dw + 1)
            acc = acc + v * dww_ref[k]
    t = acc + dwb_ref[...]                                  # token-mixer output, f32

    # ---- channel mixer: Residual( 1x1+BN -> exact GELU -> 1x1+BN ), lane-dense ----
    mdt = w1_ref.dtype
    h = jnp.dot(t.astype(mdt), w1_ref[...],
                preferred_element_type=jnp.float32) + b1_ref[...]        # (H, W*2C)
    # Module uses nn.GELU('none') -> keep exact erf form (semantics over EUP savings).
    g = 0.5 * h * (1.0 + jax.lax.erf(h * (1.0 / math.sqrt(2.0))))
    y = jnp.dot(g.astype(mdt), w2_ref[...],
                preferred_element_type=jnp.float32) + b2_ref[...]        # (H, W*C)

    o_ref[...] = (t + y).astype(o_ref.dtype)                # lane-dense residual + store


# ----------------- one-time operand packing (runs at fuse time, NOT per forward) -----------------

def pack_block_params(fused, H, W, matmul_dtype=MXU_DTYPE):
    """Build lane-dense / block-diagonal kernel operands from fused params.

    Call this ONCE after fuse_params(); pass the result to repvit_block_lane_dense.
    """
    dw_w9, dw_b, w1, b1, w2, b2 = fused
    C, hid = w1.shape
    WC = W * C

    # Depthwise 3x3 weights tiled over W; fold the W-boundary zero padding into them,
    # then pre-broadcast over the H rows so the kernel never sublane-broadcasts taps.
    dww = jnp.tile(dw_w9, (1, W))                                   # (9, W*C)
    w_of_lane = np.arange(WC) // C
    left_ok = (w_of_lane > 0).astype(np.float32)                    # may read w-1
    right_ok = (w_of_lane < W - 1).astype(np.float32)               # may read w+1
    col_mask = np.ones((9, WC), np.float32)
    for kh in range(3):
        col_mask[kh * 3 + 0, :] = left_ok                           # kw=0 taps
        col_mask[kh * 3 + 2, :] = right_ok                          # kw=2 taps
    dww = dww * jnp.asarray(col_mask)
    dww = jnp.broadcast_to(dww[:, None, :], (9, H, WC))             # (9, H, W*C)
    dwb = jnp.tile(dw_b[None, :], (1, W))                           # (1, W*C)

    # Block-diagonal fused 1x1 weights -> lane-dense matmuls (bf16 MXU operands).
    # TODO(synk): for C >= 128 stages this kron is wasteful -- use per-token matmuls.
    eye_w = jnp.eye(W, dtype=w1.dtype)
    w1bd = jnp.kron(eye_w, w1).astype(matmul_dtype)                 # (W*C, W*hid)
    w2bd = jnp.kron(eye_w, w2).astype(matmul_dtype)                 # (W*hid, W*C)
    b1t = jnp.tile(b1[None, :], (1, W))                             # (1, W*hid), f32
    b2t = jnp.tile(b2[None, :], (1, W))                             # (1, W*C),   f32

    return dict(dww=dww, dwb=dwb, w1=w1bd, b1=b1t, w2=w2bd, b2=b2t)


# ----------------------------- layout converters (once per stage) -----------------------------

def nchw_to_lane_dense(x_nchw):
    """(B, C, H, W) -> lane-dense (B, H, W*C). Do this once per stage, not per block."""
    B, C, H, W = x_nchw.shape
    return jnp.transpose(x_nchw, (0, 2, 3, 1)).reshape(B, H, W * C)


def lane_dense_to_nchw(x3d, C):
    """lane-dense (B, H, W*C) -> (B, C, H, W)."""
    B, H, WC = x3d.shape
    W = WC // C
    return jnp.transpose(x3d.reshape(B, H, W, C), (0, 3, 1, 2))


# --------------------------------- forward (lane-dense in/out) ---------------------------------

def repvit_block_lane_dense(x3d, packed, *, C):
    """x3d: (B, H, W*C) lane-dense activations. Returns same shape/dtype."""
    B, H, WC = x3d.shape
    Whid = packed['w1'].shape[1]

    return pl.pallas_call(
        functools.partial(_repvit_block_kernel, C=C),
        out_shape=jax.ShapeDtypeStruct((B, H, WC), x3d.dtype),
        grid_spec=pltpu.PrefetchScalarGridSpec(
            num_scalar_prefetch=0,
            grid=(B,),                                           # one image per step
            in_specs=[
                pl.BlockSpec((None, H, WC), lambda b: (b, 0, 0)),    # x   (per image)
                pl.BlockSpec((9, H, WC), lambda b: (0, 0, 0)),       # dw taps (invariant)
                pl.BlockSpec((1, WC), lambda b: (0, 0)),             # dw bias
                pl.BlockSpec((WC, Whid), lambda b: (0, 0)),          # w1 (block-diag, bf16)
                pl.BlockSpec((1, Whid), lambda b: (0, 0)),           # b1
                pl.BlockSpec((Whid, WC), lambda b: (0, 0)),          # w2 (block-diag, bf16)
                pl.BlockSpec((1, WC), lambda b: (0, 0)),             # b2
                # TODO(synk): mark the grid-invariant weight operands single-buffered
                #             (pipeline_mode=pl.Buffered(1)) once VMEM becomes scarce.
            ],
            out_specs=pl.BlockSpec((None, H, WC), lambda b: (b, 0, 0)),
        ),
        compiler_params=pltpu.CompilerParams(
            dimension_semantics=("parallel",),                   # use both TCs on v7x
            vmem_limit_bytes=32 * 1024 * 1024,
        ),
    )(x3d, packed['dww'], packed['dwb'],
      packed['w1'], packed['b1'], packed['w2'], packed['b2'])


def repvit_block_forward(x_nchw, packed):
    """Convenience NCHW wrapper (converts layout per call; prefer lane-dense across blocks)."""
    C = x_nchw.shape[1]
    y3d = repvit_block_lane_dense(nchw_to_lane_dense(x_nchw), packed, C=C)
    return lane_dense_to_nchw(y3d, C)


# ----------------------- parameter setup (plain-JAX glue) ----------------------

def init_params(key, inp, hidden_dim, oup):
    """Deterministic synthetic parameters matching the module's __init__ shapes."""
    assert hidden_dim == 2 * inp and inp == oup
    ks = jax.random.split(key, 24)
    C, Hd = inp, hidden_dim
    u = lambda k, s, lo, hi: jax.random.uniform(k, s, jnp.float32, lo, hi)
    n = lambda k, s, sc: sc * jax.random.normal(k, s, jnp.float32)
    bn = lambda k0, k1, k2, k3, c: (u(k0, (c,), 0.8, 1.2), n(k1, (c,), 0.1),
                                    n(k2, (c,), 0.1), u(k3, (c,), 0.8, 1.2))
    return dict(
        # RepVGGDW.conv : Conv2d(C, C, 3, groups=C, bias=False) + BN
        dw3_w=n(ks[0], (C, 1, 3, 3), 0.15),
        bn_a=bn(ks[1], ks[2], ks[3], ks[4], C),
        # RepVGGDW.conv1: Conv2d(C, C, 1, groups=C, bias=True)
        dw1_w=n(ks[5], (C,), 0.15),
        dw1_b=n(ks[6], (C,), 0.1),
        # RepVGGDW.bn
        bn_b=bn(ks[7], ks[8], ks[9], ks[10], C),
        # channel_mixer Conv2d_BN(C, 2C, 1)
        cm1_w=n(ks[11], (Hd, C), 0.15),
        bn1=bn(ks[12], ks[13], ks[14], ks[15], Hd),
        # channel_mixer Conv2d_BN(2C, C, 1, bn_weight_init=0) -- nonzero synthetic values
        # so the second matmul path is actually exercised.
        cm2_w=n(ks[16], (C, Hd), 0.12),
        bn2=bn(ks[17], ks[18], ks[19], ks[20], C),
    )


def fuse_params(p):
    """Fold eval-mode BatchNorms into conv weights/biases (pure-JAX glue, runs once)."""
    ga, ba, ma, va = p['bn_a']
    gb, bb, mb, vb = p['bn_b']
    sa = ga / jnp.sqrt(va + EPS)
    sb = gb / jnp.sqrt(vb + EPS)

    # RepVGGDW:  BN_b( dw3x3_BN_a(x) + dw1x1(x) + x )
    dw = p['dw3_w'][:, 0] * (sa * sb)[:, None, None]          # (C, 3, 3)
    dw = dw.at[:, 1, 1].add((p['dw1_w'] + 1.0) * sb)          # center tap: 1x1 + identity
    dw_b = ((ba - ma * sa) + p['dw1_b'] - mb) * sb + bb       # (C,)
    dw_w9 = jnp.transpose(dw, (1, 2, 0)).reshape(9, -1)       # (9, C), tap k = kh*3+kw

    g1, b1s, m1, v1 = p['bn1']
    s1 = g1 / jnp.sqrt(v1 + EPS)
    w1 = jnp.transpose(p['cm1_w'] * s1[:, None], (1, 0))      # (C, 2C)
    b1 = b1s - m1 * s1                                        # (2C,)

    g2, b2s, m2, v2 = p['bn2']
    s2 = g2 / jnp.sqrt(v2 + EPS)
    w2 = jnp.transpose(p['cm2_w'] * s2[:, None], (1, 0))      # (2C, C)
    b2 = b2s - m2 * s2                                        # (C,)

    return dw_w9, dw_b, w1, b1, w2, b2


# --------------------------- pure-JAX reference (NCHW) --------------------------

def reference_forward(x, p):
    def bn(y, stats):
        g, b, m, v = stats
        sh = (1, -1, 1, 1)
        return (y - m.reshape(sh)) / jnp.sqrt(v + EPS).reshape(sh) * g.reshape(sh) + b.reshape(sh)

    C = x.shape[1]
    dw = jax.lax.conv_general_dilated(
        x, p['dw3_w'], (1, 1), ((1, 1), (1, 1)),
        feature_group_count=C, dimension_numbers=('NCHW', 'OIHW', 'NCHW'))
    t = bn(bn(dw, p['bn_a'])
           + x * p['dw1_w'][None, :, None, None] + p['dw1_b'][None, :, None, None]
           + x, p['bn_b'])

    h = bn(jnp.einsum('oc,bchw->bohw', p['cm1_w'], t), p['bn1'])
    g = 0.5 * h * (1.0 + jax.lax.erf(h * (1.0 / math.sqrt(2.0))))
    y = bn(jnp.einsum('oc,bchw->bohw', p['cm2_w'], g), p['bn2'])
    return t + y


if __name__ == "__main__":
    # RepViTBlock(inp=16, hidden_dim=32, oup=16, kernel_size=3, stride=1,
    #             use_se=False, use_hs=True, gelu_approx='none')  -- small test shape.
    B, C, H, W = 2, 16, 16, 16
    hidden_dim = 2 * C

    key = jax.random.PRNGKey(0)
    kx, kp = jax.random.split(key)
    x = jax.random.normal(kx, (B, C, H, W), jnp.float32)

    params = init_params(kp, C, hidden_dim, C)
    fused = fuse_params(params)

    # Operand packing runs ONCE (hoisted out of the forward path per the perf review).
    packed = jax.tree_util.tree_map(jax.block_until_ready, pack_block_params(fused, H, W))

    # Layout conversion happens once per stage; the jitted per-block forward is lane-dense.
    block_fwd = jax.jit(functools.partial(repvit_block_lane_dense, C=C))
    x3d = nchw_to_lane_dense(x)
    out3d = jax.block_until_ready(block_fwd(x3d, packed))
    out = lane_dense_to_nchw(out3d, C)

    ref = jax.block_until_ready(reference_forward(x, params))

    # Tolerances sized for bf16 MXU operands (f32 accumulate; GELU/residual in f32).
    np.testing.assert_allclose(np.asarray(out), np.asarray(ref), rtol=2e-2, atol=5e-2)

    print("KERNEL_OK")
</pallas_src>

<mosaic_0001>
module attributes {stable_mosaic.version = 11 : i64} {
  func.func @_repvit_block_kernel(%arg0: i32, %arg1: memref<1x16x256xf32, #tpu.memory_space<vmem>>, %arg2: memref<9x16x256xf32, #tpu.memory_space<vmem>>, %arg3: memref<1x256xf32, #tpu.memory_space<vmem>>, %arg4: memref<256x512xbf16, #tpu.memory_space<vmem>>, %arg5: memref<1x512xf32, #tpu.memory_space<vmem>>, %arg6: memref<512x256xbf16, #tpu.memory_space<vmem>>, %arg7: memref<1x256xf32, #tpu.memory_space<vmem>>, %arg8: memref<1x16x256xf32, #tpu.memory_space<vmem>>) attributes {dimension_semantics = [#tpu.dimension_semantics<parallel>], iteration_bounds = array<i64: 2>, scalar_prefetch = 0 : i64, scratch_operands = 0 : i64, tpu.core_type = #tpu.core_type<tc>, window_params = [{transform_indices = @transform_0, window_bounds = array<i64: 1, 16, 256>}, {pipeline_mode = #tpu.pipeline_mode<synchronous>, transform_indices = @transform_1, window_bounds = array<i64: 9, 16, 256>}, {pipeline_mode = #tpu.pipeline_mode<synchronous>, transform_indices = @transform_2, window_bounds = array<i64: 1, 256>}, {pipeline_mode = #tpu.pipeline_mode<synchronous>, transform_indices = @transform_3, window_bounds = array<i64: 256, 512>}, {pipeline_mode = #tpu.pipeline_mode<synchronous>, transform_indices = @transform_4, window_bounds = array<i64: 1, 512>}, {pipeline_mode = #tpu.pipeline_mode<synchronous>, transform_indices = @transform_5, window_bounds = array<i64: 512, 256>}, {pipeline_mode = #tpu.pipeline_mode<synchronous>, transform_indices = @transform_6, window_bounds = array<i64: 1, 256>}, {transform_indices = @transform_7, window_bounds = array<i64: 1, 16, 256>}]} {
    %c0 = arith.constant 0 : index
    %c0_0 = arith.constant 0 : index
    %c0_1 = arith.constant 0 : index
    %0 = vector.load %arg1[%c0, %c0_0, %c0_1] : memref<1x16x256xf32, #tpu.memory_space<vmem>>, vector<1x16x256xf32>
    %1 = vector.shape_cast %0 : vector<1x16x256xf32> to vector<16x256xf32>
    %2 = tpu.iota {dimensions = array<i32: 0>} : vector<16x1xi32>
    %c0_i32 = arith.constant 0 : i32
    %3 = vector.broadcast %c0_i32 : i32 to vector<16x1xi32>
    %4 = arith.cmpi sgt, %2, %3 : vector<16x1xi32>
    %5 = arith.extui %4 : vector<16x1xi1> to vector<16x1xi32>
    %6 = arith.sitofp %5 : vector<16x1xi32> to vector<16x1xf32>
    %c15_i32 = arith.constant 15 : i32
    %7 = vector.broadcast %c15_i32 : i32 to vector<16x1xi32>
    %8 = arith.cmpi slt, %2, %7 : vector<16x1xi32>
    %9 = arith.extui %8 : vector<16x1xi1> to vector<16x1xi32>
    %10 = arith.sitofp %9 : vector<16x1xi32> to vector<16x1xf32>
    %c4 = arith.constant 4 : index
    %c0_2 = arith.constant 0 : index
    %c0_3 = arith.constant 0 : index
    %11 = vector.load %arg2[%c4, %c0_2, %c0_3] : memref<9x16x256xf32, #tpu.memory_space<vmem>>, vector<1x16x256xf32>
    %12 = vector.shape_cast %11 : vector<1x16x256xf32> to vector<16x256xf32>
    %13 = arith.mulf %1, %12 : vector<16x256xf32>
    %c1_i32 = arith.constant 1 : i32
    %14 = tpu.dynamic_rotate %1 by %c1_i32 dim 0 : vector<16x256xf32>, i32 -> vector<16x256xf32>
    %15 = vector.broadcast %6 : vector<16x1xf32> to vector<16x256xf32>
    %16 = arith.mulf %14, %15 : vector<16x256xf32>
    %c16_i32 = arith.constant 16 : i32
    %17 = tpu.dynamic_rotate %16 by %c16_i32 dim 1 : vector<16x256xf32>, i32 -> vector<16x256xf32>
    %c0_4 = arith.constant 0 : index
    %c0_5 = arith.constant 0 : index
    %c0_6 = arith.constant 0 : index
    %18 = vector.load %arg2[%c0_4, %c0_5, %c0_6] : memref<9x16x256xf32, #tpu.memory_space<vmem>>, vector<1x16x256xf32>
    %19 = vector.shape_cast %18 : vector<1x16x256xf32> to vector<16x256xf32>
    %20 = arith.mulf %17, %19 : vector<16x256xf32>
    %21 = arith.addf %13, %20 : vector<16x256xf32>
    %c1 = arith.constant 1 : index
    %c0_7 = arith.constant 0 : index
    %c0_8 = arith.constant 0 : index
    %22 = vector.load %arg2[%c1, %c0_7, %c0_8] : memref<9x16x256xf32, #tpu.memory_space<vmem>>, vector<1x16x256xf32>
    %23 = vector.shape_cast %22 : vector<1x16x256xf32> to vector<16x256xf32>
    %24 = arith.mulf %16, %23 : vector<16x256xf32>
    %25 = arith.addf %21, %24 : vector<16x256xf32>
    %c240_i32 = arith.constant 240 : i32
    %26 = tpu.dynamic_rotate %16 by %c240_i32 dim 1 : vector<16x256xf32>, i32 -> vector<16x256xf32>
    %c2 = arith.constant 2 : index
    %c0_9 = arith.constant 0 : index
    %c0_10 = arith.constant 0 : index
    %27 = vector.load %arg2[%c2, %c0_9, %c0_10] : memref<9x16x256xf32, #tpu.memory_space<vmem>>, vector<1x16x256xf32>
    %28 = vector.shape_cast %27 : vector<1x16x256xf32> to vector<16x256xf32>
    %29 = arith.mulf %26, %28 : vector<16x256xf32>
    %30 = arith.addf %25, %29 : vector<16x256xf32>
    %c16_i32_11 = arith.constant 16 : i32
    %31 = tpu.dynamic_rotate %1 by %c16_i32_11 dim 1 : vector<16x256xf32>, i32 -> vector<16x256xf32>
    %c3 = arith.constant 3 : index
    %c0_12 = arith.constant 0 : index
    %c0_13 = arith.constant 0 : index
    %32 = vector.load %arg2[%c3, %c0_12, %c0_13] : memref<9x16x256xf32, #tpu.memory_space<vmem>>, vector<1x16x256xf32>
    %33 = vector.shape_cast %32 : vector<1x16x256xf32> to vector<16x256xf32>
    %34 = arith.mulf %31, %33 : vector<16x256xf32>
    %35 = arith.addf %30, %34 : vector<16x256xf32>
    %c240_i32_14 = arith.constant 240 : i32
    %36 = tpu.dynamic_rotate %1 by %c240_i32_14 dim 1 : vector<16x256xf32>, i32 -> vector<16x256xf32>
    %c5 = arith.constant 5 : index
    %c0_15 = arith.constant 0 : index
    %c0_16 = arith.constant 0 : index
    %37 = vector.load %arg2[%c5, %c0_15, %c0_16] : memref<9x16x256xf32, #tpu.memory_space<vmem>>, vector<1x16x256xf32>
    %38 = vector.shape_cast %37 : vector<1x16x256xf32> to vector<16x256xf32>
    %39 = arith.mulf %36, %38 : vector<16x256xf32>
    %40 = arith.addf %35, %39 : vector<16x256xf32>
    %c15_i32_17 = arith.constant 15 : i32
    %41 = tpu.dynamic_rotate %1 by %c15_i32_17 dim 0 : vector<16x256xf32>, i32 -> vector<16x256xf32>
    %42 = vector.broadcast %10 : vector<16x1xf32> to vector<16x256xf32>
    %43 = arith.mulf %41, %42 : vector<16x256xf32>
    %c16_i32_18 = arith.constant 16 : i32
    %44 = tpu.dynamic_rotate %43 by %c16_i32_18 dim 1 : vector<16x256xf32>, i32 -> vector<16x256xf32>
    %c6 = arith.constant 6 : index
    %c0_19 = arith.constant 0 : index
    %c0_20 = arith.constant 0 : index
    %45 = vector.load %arg2[%c6, %c0_19, %c0_20] : memref<9x16x256xf32, #tpu.memory_space<vmem>>, vector<1x16x256xf32>
    %46 = vector.shape_cast %45 : vector<1x16x256xf32> to vector<16x256xf32>
    %47 = arith.mulf %44, %46 : vector<16x256xf32>
    %48 = arith.addf %40, %47 : vector<16x256xf32>
    %c7 = arith.constant 7 : index
    %c0_21 = arith.constant 0 : index
    %c0_22 = arith.constant 0 : index
    %49 = vector.load %arg2[%c7, %c0_21, %c0_22] : memref<9x16x256xf32, #tpu.memory_space<vmem>>, vector<1x16x256xf32>
    %50 = vector.shape_cast %49 : vector<1x16x256xf32> to vector<16x256xf32>
    %51 = arith.mulf %43, %50 : vector<16x256xf32>
    %52 = arith.addf %48, %51 : vector<16x256xf32>
    %c240_i32_23 = arith.constant 240 : i32
    %53 = tpu.dynamic_rotate %43 by %c240_i32_23 dim 1 : vector<16x256xf32>, i32 -> vector<16x256xf32>
    %c8 = arith.constant 8 : index
    %c0_24 = arith.constant 0 : index
    %c0_25 = arith.constant 0 : index
    %54 = vector.load %arg2[%c8, %c0_24, %c0_25] : memref<9x16x256xf32, #tpu.memory_space<vmem>>, vector<1x16x256xf32>
    %55 = vector.shape_cast %54 : vector<1x16x256xf32> to vector<16x256xf32>
    %56 = arith.mulf %53, %55 : vector<16x256xf32>
    %57 = arith.addf %52, %56 : vector<16x256xf32>
    %c0_26 = arith.constant 0 : index
    %c0_27 = arith.constant 0 : index
    %58 = vector.load %arg3[%c0_26, %c0_27] : memref<1x256xf32, #tpu.memory_space<vmem>>, vector<1x256xf32>
    %59 = vector.broadcast %58 : vector<1x256xf32> to vector<16x256xf32>
    %60 = arith.addf %57, %59 : vector<16x256xf32>
    %61 = arith.truncf %60 : vector<16x256xf32> to vector<16x256xbf16>
    %c0_28 = arith.constant 0 : index
    %c0_29 = arith.constant 0 : index
    %62 = vector.load %arg4[%c0_28, %c0_29] : memref<256x512xbf16, #tpu.memory_space<vmem>>, vector<256x512xbf16>
    %cst = arith.constant dense<0.000000e+00> : vector<16x512xf32>
    %63 = tpu.matmul %61, %62, %cst {dimension_numbers = #tpu.dot_dimension_numbers<[1], [0], [0], [1], [0, 0, 1, 1], [], []>} : vector<16x256xbf16>, vector<256x512xbf16>, vector<16x512xf32> -> vector<16x512xf32>
    %c0_30 = arith.constant 0 : index
    %c0_31 = arith.constant 0 : index
    %64 = vector.load %arg5[%c0_30, %c0_31] : memref<1x512xf32, #tpu.memory_space<vmem>>, vector<1x512xf32>
    %65 = vector.broadcast %64 : vector<1x512xf32> to vector<16x512xf32>
    %66 = arith.addf %63, %65 : vector<16x512xf32>
    %cst_32 = arith.constant 5.000000e-01 : f32
    %67 = vector.broadcast %cst_32 : f32 to vector<16x512xf32>
    %68 = arith.mulf %67, %66 : vector<16x512xf32>
    %cst_33 = arith.constant 0.707106769 : f32
    %69 = vector.broadcast %cst_33 : f32 to vector<16x512xf32>
    %70 = arith.mulf %66, %69 : vector<16x512xf32>
    %71 = math.erf %70 : vector<16x512xf32>
    %cst_34 = arith.constant 1.000000e+00 : f32
    %72 = vector.broadcast %cst_34 : f32 to vector<16x512xf32>
    %73 = arith.addf %72, %71 : vector<16x512xf32>
    %74 = arith.mulf %68, %73 : vector<16x512xf32>
    %75 = arith.truncf %74 : vector<16x512xf32> to vector<16x512xbf16>
    %c0_35 = arith.constant 0 : index
    %c0_36 = arith.constant 0 : index
    %76 = vector.load %arg6[%c0_35, %c0_36] : memref<512x256xbf16, #tpu.memory_space<vmem>>, vector<512x256xbf16>
    %cst_37 = arith.constant dense<0.000000e+00> : vector<16x256xf32>
    %77 = tpu.matmul %75, %76, %cst_37 {dimension_numbers = #tpu.dot_dimension_numbers<[1], [0], [0], [1], [0, 0, 1, 1], [], []>} : vector<16x512xbf16>, vector<512x256xbf16>, vector<16x256xf32> -> vector<16x256xf32>
    %c0_38 = arith.constant 0 : index
    %c0_39 = arith.constant 0 : index
    %78 = vector.load %arg7[%c0_38, %c0_39] : memref<1x256xf32, #tpu.memory_space<vmem>>, vector<1x256xf32>
    %79 = vector.broadcast %78 : vector<1x256xf32> to vector<16x256xf32>
    %80 = arith.addf %77, %79 : vector<16x256xf32>
    %81 = arith.addf %60, %80 : vector<16x256xf32>
    %c0_40 = arith.constant 0 : index
    %c0_41 = arith.constant 0 : index
    %c0_42 = arith.constant 0 : index
    %82 = vector.load %arg8[%c0_40, %c0_41, %c0_42] : memref<1x16x256xf32, #tpu.memory_space<vmem>>, vector<1x16x256xf32>
    %83 = vector.shape_cast %82 : vector<1x16x256xf32> to vector<16x256xf32>
    %84 = vector.shape_cast %81 : vector<16x256xf32> to vector<1x16x256xf32>
    tpu.vector_store %arg8[%c0_40, %c0_41, %c0_42], %84 {strides = array<i32>} : memref<1x16x256xf32, #tpu.memory_space<vmem>>, vector<1x16x256xf32>,
    return
  }
  func.func @transform_0(%arg0: i32) -> (i32, i32, i32) {
    %c0_i32 = arith.constant 0 : i32
    %c0_i32_0 = arith.constant 0 : i32
    %c0_i32_1 = arith.constant 0 : i32
    return %arg0, %c0_i32, %c0_i32_0 : i32, i32, i32
  }
  func.func @transform_1(%arg0: i32) -> (i32, i32, i32) {
    %c0_i32 = arith.constant 0 : i32
    %c0_i32_0 = arith.constant 0 : i32
    %c0_i32_1 = arith.constant 0 : i32
    %c0_i32_2 = arith.constant 0 : i32
    return %c0_i32, %c0_i32_0, %c0_i32_1 : i32, i32, i32
  }
  func.func @transform_2(%arg0: i32) -> (i32, i32) {
    %c0_i32 = arith.constant 0 : i32
    %c0_i32_0 = arith.constant 0 : i32
    %c0_i32_1 = arith.constant 0 : i32
    return %c0_i32, %c0_i32_0 : i32, i32
  }
  func.func @transform_3(%arg0: i32) -> (i32, i32) {
    %c0_i32 = arith.constant 0 : i32
    %c0_i32_0 = arith.constant 0 : i32
    %c0_i32_1 = arith.constant 0 : i32
    return %c0_i32, %c0_i32_0 : i32, i32
  }
  func.func @transform_4(%arg0: i32) -> (i32, i32) {
    %c0_i32 = arith.constant 0 : i32
    %c0_i32_0 = arith.constant 0 : i32
    %c0_i32_1 = arith.constant 0 : i32
    return %c0_i32, %c0_i32_0 : i32, i32
  }
  func.func @transform_5(%arg0: i32) -> (i32, i32) {
    %c0_i32 = arith.constant 0 : i32
    %c0_i32_0 = arith.constant 0 : i32
    %c0_i32_1 = arith.constant 0 : i32
    return %c0_i32, %c0_i32_0 : i32, i32
  }
  func.func @transform_6(%arg0: i32) -> (i32, i32) {
    %c0_i32 = arith.constant 0 : i32
    %c0_i32_0 = arith.constant 0 : i32
    %c0_i32_1 = arith.constant 0 : i32
    return %c0_i32, %c0_i32_0 : i32, i32
  }
  func.func @transform_7(%arg0: i32) -> (i32, i32, i32) {
    %c0_i32 = arith.constant 0 : i32
    %c0_i32_0 = arith.constant 0 : i32
    %c0_i32_1 = arith.constant 0 : i32
    return %arg0, %c0_i32, %c0_i32_0 : i32, i32, i32
  }
}

</mosaic_0001>

<bundles_post_ra>
// kernel: repvit_block_lane_dense.1
= control target key start
LH: loop header
LB: loop body
LE: loop exit
PB: predicated region body
PF: predicated region fallthrough
CT: control target
= control target key end

     0   :  { %12 = vsyncpa [#allocation3], 0  ;;  %s2997_s0 = inlined_call_operand.hbm [shape: f32[2,16,256], index: 0, kind: input, shape index: {}]   ;;  %s2998_s1 = inlined_call_operand.hbm [shape: f32[9,16,256], index: 1, kind: input, shape index: {}]   ;;  %s2999_s2 = inlined_call_operand.vmem [shape: f32[1,256], index: 2, kind: input, shape index: {}]   ;;  %s3000_s3 = inlined_call_operand.hbm [shape: bf16[256,512], index: 3, kind: input, shape index: {}]   ;;  %s3001_s4 = inlined_call_operand.hbm [shape: f32[1,512], index: 4, kind: input, shape index: {}]   ;;  %s3002_s5 = inlined_call_operand.hbm [shape: bf16[512,256], index: 5, kind: input, shape index: {}]   ;;  %s3003_s6 = inlined_call_operand.vmem [shape: f32[1,256], index: 6, kind: input, shape index: {}]   ;;  %s3004_s7 = inlined_call_operand.hbm [shape: f32[2,16,256], index: 7, kind: output, shape index: {}]  }
   0x1   :  { %14 = vsyncpa [#allocation3 + $0x1], 0 }
   0x2   :  { %15 = vsyncpa [#allocation6], 0 }
   0x3   :  { %16 = vsyncpa [#allocation9], 0 }
   0x4   :  { %17 = vsyncpa [#allocation4], 0 }
   0x5   :  { %19 = vsyncpa [#allocation4 + $0x1], 0  ;;  %s2492_s24 = smov 0   ;;  %s2494_s25 = smov 0  }
   0x6   :  { %s2496_s26 = smov 0   ;;  %s2498_s27 = smov 0  }
   0x7 LB: > { %s2513_s28 = sadd.s32 4294967295, %s2436_s27   ;;  %s1755_s29 = sadd.s32 4294967294, %s2436_s27   ;;  %s2436_s27 = sphi %s2498_s27, %s3030_s27   ;;  %s2432_s26 = sphi %s2496_s26, %s3029_s26   ;;  %s2428_s25 = sphi %s2494_s25, %s3028_s25   ;;  %s2424_s24 = sphi %s2492_s24, %s3027_s24  }
   0x8   : > { %p45_p0 = scmp.ne.s32.totalorder %s2428_s25, %s2424_s24  ;;  %p3005_p1 = scmp.eq.s32.totalorder %s2513_s28, 0 }
   0x9   : > { %p201_p3 = scmp.eq.s32.totalorder %s1755_s29, 1  ;;  %p1756_p5 = scmp.ge.s32.totalorder %s2436_s27, 1 }
   0xa   : > { %p2522_p4 = por %p3005_p1, %p45_p0  ;;  %p208_p7 = scmp.lt.s32.totalorder %s2436_s27, 3 }
   0xb   : > { %p2527_p6 = por %p201_p3, %p45_p0  ;;  %s2438_s10 = smov [#allocation5]  }
   0xc   : > { %s3009_s30 = scalar_select %p2522_p4, 1, 0 }
   0xd   : > { %s3010_s8 = scalar_select %p2527_p6, 1, 0 }
   0xe   : > { %p2532_p8 = pnand %p1756_p5, %p208_p7  ;;  %s220_s11 = sshll.u32 %s2438_s10, 4  ;;  %s2536_s11 = int_to_ptr.vmem [resolvable:$true] %s220_s11 }
   0xf   : > { %3011 = sst [smem:[#allocation16_spill]] %s3010_s8  ;;  %s2439_s13 = smov [#allocation8]  }
  0x10   : > { %s3012_s9 = scalar_select %p2532_p8, 1, 0 }
  0x11   : > { %p1937_p9 = pneg %p2532_p8  ;;  %s250_s14 = sshll.u32 %s2439_s13, 4  ;;  %s2547_s14 = int_to_ptr.vmem [resolvable:$true] %s250_s14 }
  0x12   : > { %s2440_s15 = smov [#allocation7]   ;;  %s2220_s19 = scalar_lea.hbm %s2998_s1, 4608 }
  0x13   : > { %p2543_p11 = pnand %p1937_p9, %p3005_p1  ;;  %s2549_s16 = sshll.u32 %s2440_s15, 4  ;;  %s237_s16 = int_to_ptr.vmem [resolvable:$true] %s2549_s16 }
  0x14   : > { %p2221_p12 = scmp.ne.s32.totalorder %s2998_s1, %s2220_s19  ;;  %p2227_p5 = scmp.lt.u32.totalorder %s2220_s19, %s2998_s1 }
  0x15   : > { %p2559_p13 = pneg %p2543_p11 }
  0x17   : > { %p2223_p0 = pnand %p2559_p13, %p2221_p12 }
  0x19   : > { %p2224_p3 = pneg %p2223_p0 }
  0x1b   : > { %p2229_p7 = pnand %p2227_p5, %p2224_p3 }
  0x1d   : > { %2232 = shalt.err (!%p2229_p7)
}
  0x1e   : > { %s2233_s10 = scalar_lea.vmem %s2536_s11, 4608  ;;  %p2241_p2 = scmp.lt.s32.totalorder %s2536_s11, %s2536_s11 }
  0x1f   : > { %p2234_p9 = scmp.ne.s32.totalorder %s2536_s11, %s2233_s10  ;;  %p2242_p6 = scmp.lt.s32.totalorder %s2233_s10, %s2233_s10 }
  0x21   : > { %p2236_p10 = pnand %p2234_p9, %p2559_p13  ;;  %p2243_p12 = por %p2242_p6, %p2241_p2 }
  0x23   : > { %p2237_p1 = pneg %p2236_p10 }
  0x25   : > { %p2244_p0 = pnand %p2243_p12, %p2237_p1 }
  0x27   : > { %2247 = shalt.err (!%p2244_p0)
}
  0x28   : > { %s2441_s13 = smov 256   ;;  %s2442_s15 = smov 16  }
  0x29   : > { %1940 = dma.hbm_to_vmem [thread:$0]  (!%p2543_p11), %s2998_s1, 4608, %s2536_s11, [#allocation6], %s2441_s13, %s2441_s13, %s2442_s15  }
  0x2a   : > { %s2248_s21 = scalar_lea.hbm %s3001_s4, 64 }
  0x2b   : > { %p2249_p1 = scmp.ne.s32.totalorder %s3001_s4, %s2248_s21  ;;  %p2255_p10 = scmp.lt.u32.totalorder %s2248_s21, %s3001_s4 }
  0x2d   : > { %p2251_p2 = pnand %p2249_p1, %p2559_p13 }
  0x2f   : > { %p2252_p6 = pneg %p2251_p2 }
  0x31   : > { %p2257_p3 = pnand %p2255_p10, %p2252_p6 }
  0x33   : > { %2260 = shalt.err (!%p2257_p3)
}
  0x34   : > { %s2261_s11 = scalar_lea.vmem %s2547_s14, 64  ;;  %p2269_p12 = scmp.lt.s32.totalorder %s2547_s14, %s2547_s14 }
  0x35   : > { %p2262_p5 = scmp.ne.s32.totalorder %s2547_s14, %s2261_s11  ;;  %p2270_p0 = scmp.lt.s32.totalorder %s2261_s11, %s2261_s11 }
  0x37   : > { %p2264_p7 = pnand %p2262_p5, %p2559_p13  ;;  %p2271_p1 = por %p2270_p0, %p2269_p12 }
  0x39   : > { %p2265_p9 = pneg %p2264_p7 }
  0x3b   : > { %p2272_p2 = pnand %p2271_p1, %p2265_p9 }
  0x3d   : > { %2275 = shalt.err (!%p2272_p2)
}
  0x3e   : > { %1946 = dma.hbm_to_vmem [thread:$0]  (!%p2543_p11), %s3001_s4, 64, %s2547_s14, [#allocation9]  }
  0x3f   : > { %s2276_s20 = scalar_lea.hbm %s3000_s3, 8192 }
  0x40   : > { %p2277_p6 = scmp.ne.s32.totalorder %s3000_s3, %s2276_s20  ;;  %p2283_p5 = scmp.lt.u32.totalorder %s2276_s20, %s3000_s3 }
  0x42   : > { %p2279_p10 = pnand %p2277_p6, %p2559_p13 }
  0x44   : > { %p2280_p3 = pneg %p2279_p10 }
  0x46   : > { %p2285_p7 = pnand %p2283_p5, %p2280_p3 }
  0x48   : > { %2288 = shalt.err (!%p2285_p7)
}
  0x49   : > { %s2289_s11 = scalar_lea.vmem %s237_s16, 8192  ;;  %p2297_p1 = scmp.lt.s32.totalorder %s237_s16, %s237_s16 }
  0x4a   : > { %p2290_p9 = scmp.ne.s32.totalorder %s237_s16, %s2289_s11  ;;  %p2298_p2 = scmp.lt.s32.totalorder %s2289_s11, %s2289_s11 }
  0x4c   : > { %p2292_p12 = pnand %p2290_p9, %p2559_p13  ;;  %p2299_p4 = por %p2298_p2, %p2297_p1 }
  0x4e   : > { %p2293_p0 = pneg %p2292_p12 }
  0x50   : > { %p2300_p8 = pnand %p2299_p4, %p2293_p0 }
  0x52   : > { %2303 = shalt.err (!%p2300_p8)
}
  0x53   : > { %1943 = dma.hbm_to_vmem [thread:$0]  (!%p2543_p11), %s3000_s3, 8192, %s237_s16, [#allocation6], %s2441_s13, %s2441_s13, %s2442_s15  }
  0x54   : > { %s2443_s17 = smov [#allocation10]   ;;  %s2304_s21 = scalar_lea.hbm %s3002_s5, 8192 }
  0x55   : > { %s260_s18 = sshll.u32 %s2443_s17, 4  ;;  %p2305_p4 = scmp.ne.s32.totalorder %s3002_s5, %s2304_s21  ;;  %s261_s18 = int_to_ptr.vmem [resolvable:$true] %s260_s18 }
  0x56   : > { %p2311_p10 = scmp.lt.u32.totalorder %s2304_s21, %s3002_s5 }
  0x57   : > { %p2307_p8 = pnand %p2305_p4, %p2559_p13 }
  0x59   : > { %p2308_p6 = pneg %p2307_p8 }
  0x5b   : > { %p2313_p3 = pnand %p2311_p10, %p2308_p6 }
  0x5d   : > { %2316 = shalt.err (!%p2313_p3)
}
  0x5e   : > { %s2317_s16 = scalar_lea.vmem %s261_s18, 8192  ;;  %p2325_p12 = scmp.lt.s32.totalorder %s261_s18, %s261_s18 }
  0x5f   : > { %p2318_p5 = scmp.ne.s32.totalorder %s261_s18, %s2317_s16  ;;  %p2326_p0 = scmp.lt.s32.totalorder %s2317_s16, %s2317_s16 }
  0x61   : > { %p2320_p7 = pnand %p2318_p5, %p2559_p13  ;;  %p2327_p1 = por %p2326_p0, %p2325_p12 }
  0x63   : > { %p2321_p9 = pneg %p2320_p7 }
  0x65   : > { %p2328_p2 = pnand %p2327_p1, %p2321_p9 }
  0x67   : > { %2331 = shalt.err (!%p2328_p2)
}
  0x68   : > { %s2444_s14 = smov 128   ;;  %s2445_s22 = smov 8  }
  0x69   : > { %1949 = dma.hbm_to_vmem [thread:$0]  (!%p2543_p11), %s3002_s5, 8192, %s261_s18, [#allocation9], %s2444_s14, %s2444_s14, %s2445_s22  }
  0x6a   : > { %s2647_s19 = sadd.s32 1, %s2436_s27   ;;  %s32_s21 = sadd.s32 1, %s2432_s26 }
  0x6b   : > { %s29_s20 = ssub.s32 %s2436_s27, %s2647_s19  ;;  %p39_p4 = scmp.ne.s32.totalorder %s2432_s26, %s2428_s25 }
  0x6c   : > { %p30_p13 = scmp.eq.s32.totalorder %s29_s20, 0  ;;  %p40_p8 = scmp.eq.s32.totalorder %s2436_s27, 0 }
  0x6d   : > { %p3015_p10 = scmp.eq.s32.totalorder %s2513_s28, 1  ;;  %p1962_p5 = scmp.lt.s32.totalorder %s2436_s27, 2 }
  0x6e   : > { %s2656_s23 = scalar_select %p30_p13, %s2432_s26, %s32_s21  }
  0x6f   : > { %p41_p6 = por %p40_p8, %p39_p4  ;;  %p2660_p3 = por %p3015_p10, %p39_p4 }
  0x70   : > { %s277_s12 = sand.u32 1, %s2432_s26   ;;  %s1907_s18 = sshll.u32 %s2436_s27, 9 }
  0x71   : > { %s1762_s10 = sshll.u32 %s277_s12, 5  ;;  %s2670_s14 = scalar_lea.hbm %s2997_s0, %s1907_s18 }
  0x72   : > { %s281_s22 = scalar_lea.vmem [#allocation2], %s1762_s10  ;;  %p2674_p11 = pnand %p1962_p5, %p41_p6 }
  0x73   : > { %s288_s8 = sshll.u32 %s281_s22, 4  ;;  %s2678_s20 = scalar_lea.sflag [#allocation3], %s277_s12  ;;  %s2672_s8 = int_to_ptr.vmem [resolvable:$true] %s288_s8 }
  0x74   : > { %s2332_s21 = scalar_lea.hbm %s2670_s14, 512  ;;  %p2334_p9 = pneg %p2674_p11 }
  0x75   : > { %p2333_p7 = scmp.ne.s32.totalorder %s2670_s14, %s2332_s21  ;;  %s2337_s11 = scalar_lea.hbm %s2997_s0, 1024 }
  0x76   : > { %p2338_p1 = scmp.lt.u32.totalorder %s2670_s14, %s2997_s0  ;;  %p2339_p2 = scmp.lt.u32.totalorder %s2337_s11, %s2332_s21 }
  0x77   : > { %p2335_p12 = pnand %p2334_p9, %p2333_p7  ;;  %p2341_p4 = scmp.lt.u32.totalorder %s2332_s21, %s2670_s14 }
  0x78   : > { %p2340_p13 = por %p2339_p2, %p2338_p1 }
  0x79   : > { %p2336_p0 = pneg %p2335_p12 }
  0x7a   : > { %p2342_p8 = por %p2341_p4, %p2340_p13 }
  0x7c   : > { %p2343_p6 = pnand %p2342_p8, %p2336_p0 }
  0x7e   : > { %2346 = shalt.err (!%p2343_p6)
}
  0x7f   : > { %s2347_s12 = scalar_lea.vmem %s2672_s8, 512  ;;  %s2446_s10 = smov [#allocation2]  }
  0x80   : > { %p2348_p10 = scmp.ne.s32.totalorder %s2672_s8, %s2347_s12  ;;  %s2352_s18 = sshll.u32 %s2446_s10, 4  ;;  %s2353_s18 = int_to_ptr.vmem [resolvable:$false] %s2352_s18 }
  0x81   : > { %s2354_s16 = scalar_lea.vmem %s2353_s18, 1024  ;;  %p2355_p12 = scmp.lt.s32.totalorder %s2672_s8, %s2353_s18 }
  0x82   : > { %p2350_p5 = pnand %p2348_p10, %p2334_p9  ;;  %p2356_p1 = scmp.lt.s32.totalorder %s2354_s16, %s2347_s12 }
  0x84   : > { %p2351_p7 = pneg %p2350_p5  ;;  %p2357_p2 = por %p2356_p1, %p2355_p12 }
  0x86   : > { %p2358_p13 = pnand %p2357_p2, %p2351_p7 }
  0x88   : > { %2361 = shalt.err (!%p2358_p13)
}
  0x89   : > { %1953 = dma.hbm_to_vmem [thread:$0]  (!%p2674_p11), %s2670_s14, 512, %s2672_s8, %s2678_s20, %s2441_s13, %s2441_s13, %s2442_s15  }
  0x8a   : > { %p3018_p9 = scmp.ne.s32.totalorder %s3012_s9, 0 }
  0x8b   : > { %s2712_s21 = sand.u32 (!%p3018_p9), 1, %s2428_s25   ;;  %p3019_p0 = scmp.ne.s32.totalorder (!%p3018_p9), %s3009_s30, 0 }
  0x8c   : > { %300 = sbr.rel (%p3018_p9) target bundleno = 865 (0x361), region = 48  ;;  %s1766_s11 = sshll.u32 (!%p3018_p9), %s2712_s21, 5 }
  0x8d   : > { %s303_s22 = scalar_lea.sflag (!%p3018_p9), [#allocation3], %s2712_s21  ;;  %s306_s17 = scalar_lea.vmem (!%p3018_p9), [#allocation2], %s1766_s11 }
  0x93   : > { %2407 = dma.done.wait (%p3019_p0), %s303_s22, 512  }
  0x94   : > { %2409 = vsyncadd (%p3019_p0), %s303_s22, 4294966784  ;;  %p3020_p11 = scmp.eq.s32.totalorder %s2513_s28, 0 }
  0x96   : > { %2411 = dma.done.wait (%p3020_p11), [#allocation6], 12800   ;;  %p3021_p4 = pmov %p3020_p11 }
  0x98   : > { %2413 = vsyncadd (%p3021_p4), [#allocation6], 4294954496  ;;  %p3022_p8 = pmov %p3021_p4 }
  0x99   : > { %p3023_p6 = pmov %p3021_p4 }
  0x9a   : > { %2415 = dma.done.wait (%p3022_p8), [#allocation9], 8256  }
  0x9b   : > { %2417 = vsyncadd (%p3023_p6), [#allocation9], 4294959040  ;;  %v357_v0 = vlaneseq  ;;  %v2734_v2 = vld [vmem:[%s306_s17 + $0x8] sm:$0xff]  ;;  %v2736_v3 = vld [vmem:[%s306_s17 + $0x18] sm:$0xff]  ;;  %v2447_v10 = vmov 0.0   ;;  %s2448_s30 = smov 16  }
  0x9c   : > { %v382_v4 = vrot.slane %v2734_v2, 7  ;;  %v384_v5 = vrot.slane %v2736_v3, 7  ;;  %v2741_v6 = vld [vmem:[%s306_s17] sm:$0xff]  ;;  %v2743_v7 = vld [vmem:[%s306_s17 + $0x10] sm:$0xff]  ;;  %s2449_s9 = smov 112   ;;  %v511_v37 = vrot.slane %v2734_v2, 1 }
  0x9d   : > { %v2731_v1 = vshrl.u32 %v357_v0, 7  ;;  %v381_v8 = vrot.slane %v2741_v6, 7  ;;  %v383_v9 = vrot.slane %v2743_v7, 7  ;;  %v2012_v16 = vld [vmem:[#allocation7 + $0x4] ss:$16 sps:$4 sm:$0xff]   ;;  %v510_v31 = vrot.slane %v2741_v6, 1 }
  0x9e   : > { %v2014_v17 = vld [vmem:[#allocation7] ss:$16 sps:$4 sm:$0xff]   ;;  %v2015_v18 = vld [vmem:[#allocation7 + $0x24] ss:$16 sps:$4 sm:$0xff]   ;;  %1010 = vmatprep.subr.bf16.mxu1 %v2012_v16  ;;  %v512_v32 = vrot.slane %v2743_v7, 1  ;;  %v513_v38 = vrot.slane %v2736_v3, 1 }
  0x9f   : > { %vm360_vm0 = vcmp.gt.s32.totalorder %v2731_v1, 0  ;;  %vm385_vm1 = vcmp.lt.s32.totalorder %v2731_v1, 1  ;;  %1011 = vmatpush1.bf16.msra.mxu1 %v2014_v17  ;;  %v2017_v19 = vld [vmem:[#allocation7 + $0x20] ss:$16 sps:$4 sm:$0xff]   ;;  %v2018_v21 = vld [vmem:[#allocation7 + $0x44] ss:$16 sps:$4 sm:$0xff]  }
  0xa0   : > { %v1772_v11 = vsel %vm360_vm0, 1.0, %v2447_v10  ;;  %v2749_v12 = vsel %vm385_vm1, %v382_v4, %v384_v5  ;;  %v2755_v13 = vsel %vm385_vm1, %v381_v8, %v383_v9  ;;  %v388_v14 = vsel %vm385_vm1, %v383_v9, %v381_v8  ;;  %1012 = vmatprep.subr.bf16.mxu1 %v2015_v18  ;;  %v2020_v23 = vld [vmem:[#allocation7 + $0x40] ss:$16 sps:$4 sm:$0xff]   ;;  %v2021_v24 = vld [vmem:[#allocation7 + $0x64] ss:$16 sps:$4 sm:$0xff]   ;;  %v425_v16 = vld [vmem:[#allocation5 + $0x38] sm:$0xff] }
  0xa1   : > { %400 = vrot.lane.b32.xlu1 %v2749_v12, %s2448_s30  ;;  %396 = vrot.lane.b32.xlu0 %v2755_v13, %s2448_s30  ;;  %v2761_v15 = vmul.f32 %v1772_v11, %v388_v14  ;;  %v389_v20 = vsel %vm385_vm1, %v384_v5, %v382_v4  ;;  %v2023_v25 = vld [vmem:[#allocation7 + $0x60] ss:$16 sps:$4 sm:$0xff]   ;;  %v2024_v26 = vld [vmem:[#allocation7 + $0x84] ss:$16 sps:$4 sm:$0xff]   ;;  %v359_v29 = vadd.s32 8, %v2731_v1  ;;  %vm514_vm3 = vcmp.lt.s32.totalorder %v2731_v1, 7 }
  0xa2   : > { %v2771_v22 = vmul.f32 %v1772_v11, %v389_v20  ;;  %v2026_v27 = vld [vmem:[#allocation7 + $0x80] ss:$16 sps:$4 sm:$0xff]   ;;  %v2027_v28 = vld [vmem:[#allocation7 + $0xa4] ss:$16 sps:$4 sm:$0xff]   ;;  %v517_v36 = vsel %vm514_vm3, %v512_v32, %v510_v31  ;;  %v518_v43 = vsel %vm514_vm3, %v513_v38, %v511_v37  ;;  %v2809_v44 = vsel %vm514_vm3, %v510_v31, %v512_v32  ;;  %v2062_v62 = vld [vmem:[#allocation7 + $0xc] ss:$16 sps:$4 sm:$0xff]  }
  0xa3   : > { %1013 = vmatpush1.bf16.msra.mxu1 %v2017_v19  ;;  %v2029_v30 = vld [vmem:[#allocation7 + $0xa0] ss:$16 sps:$4 sm:$0xff]   ;;  %v2030_v33 = vld [vmem:[#allocation7 + $0xc4] ss:$16 sps:$4 sm:$0xff]   ;;  %vm367_vm2 = vcmp.lt.s32.totalorder %v359_v29, 15  ;;  %v2819_v48 = vsel %vm514_vm3, %v511_v37, %v513_v38  ;;  %v2834_v8 = vand.u32 127, %v357_v0 }
  0xa4   : > { %1014 = vmatprep.subr.bf16.mxu1 %v2018_v21  ;;  %v2032_v34 = vld [vmem:[#allocation7 + $0xc0] ss:$16 sps:$4 sm:$0xff]   ;;  %v1773_v35 = vsel %vm367_vm2, 1.0, %v2447_v10  ;;  %v2033_v39 = vld [vmem:[#allocation7 + $0xe4] ss:$16 sps:$4 sm:$0xff]   ;;  %v376_v14 = vld [vmem:[#allocation5 + $0x98] sm:$0xff] }
  0xa5   : > { %436 = vrot.lane.b32.xlu1 %v2755_v13, %s2449_s9  ;;  %394 = vrot.lane.b32.xlu0 %v2761_v15, %s2448_s30  ;;  %v2035_v40 = vld [vmem:[#allocation7 + $0xe0] ss:$16 sps:$4 sm:$0xff]   ;;  %v2801_v41 = vmul.f32 %v1773_v35, %v517_v36  ;;  %v2036_v42 = vld [vmem:[#allocation7 + $0x104] ss:$16 sps:$4 sm:$0xff]   ;;  %v2813_v45 = vmul.f32 %v1773_v35, %v518_v43  ;;  %vm404_vm4 = vcmp.lt.s32.totalorder %v2834_v8, 16  ;;  %v412_v21 = vld [vmem:[#allocation5 + $0x18] sm:$0xff] }
  0xa6   : > { %v2038_v46 = vld [vmem:[#allocation7 + $0x100] ss:$16 sps:$4 sm:$0xff]   ;;  %v2039_v47 = vld [vmem:[#allocation7 + $0x124] ss:$16 sps:$4 sm:$0xff]   ;;  %vm442_vm5 = vcmp.lt.s32.totalorder %v2834_v8, 112  ;;  %v451_v37 = vld [vmem:[#allocation5 + $0x58] sm:$0xff] }
  0xa7   : > { %1015 = vmatpush1.bf16.msra.mxu1 %v2020_v23  ;;  %v2041_v49 = vld [vmem:[#allocation7 + $0x120] ss:$16 sps:$4 sm:$0xff]   ;;  %v2042_v50 = vld [vmem:[#allocation7 + $0x144] ss:$16 sps:$4 sm:$0xff]   ;;  %s352_s20 = scalar_lea.vmem [#allocation11], %s1766_s11  ;;  %s1908_s10 = sshll.u32 %s2513_s28, 9 }
  0xa8   : > { %1016 = vmatprep.subr.bf16.mxu1 %v2021_v24  ;;  %v2044_v51 = vld [vmem:[#allocation7 + $0x140] ss:$16 sps:$4 sm:$0xff]   ;;  %v2045_v52 = vld [vmem:[#allocation7 + $0x164] ss:$16 sps:$4 sm:$0xff]   ;;  %v380_v24 = vmul.f32 %v376_v14, %v2736_v3  ;;  %s1644_s12 = sshll.u32 %s352_s20, 4  ;;  %s2952_s11 = scalar_lea.hbm %s3004_s7, %s1908_s10  ;;  %s2945_s12 = int_to_ptr.vmem [resolvable:$true] %s1644_s12 }
  0xa9   : > { %440 = vrot.lane.b32.xlu1 %v2749_v12, %s2449_s9  ;;  %434 = vrot.lane.b32.xlu0 %v2761_v15, %s2449_s9  ;;  %v2047_v53 = vld [vmem:[#allocation7 + $0x160] ss:$16 sps:$4 sm:$0xff]   ;;  %v2048_v54 = vld [vmem:[#allocation7 + $0x184] ss:$16 sps:$4 sm:$0xff]   ;;  %s1631_s28 = scalar_lea.sflag [#allocation4], %s2712_s21  ;;  %s2362_s22 = scalar_lea.vmem %s2945_s12, 512 }
  0xaa   : > { %v2050_v55 = vld [vmem:[#allocation7 + $0x180] ss:$16 sps:$4 sm:$0xff]   ;;  %v2051_v56 = vld [vmem:[#allocation7 + $0x1a4] ss:$16 sps:$4 sm:$0xff]   ;;  %p2363_p10 = scmp.ne.s32.totalorder %s2945_s12, %s2362_s22  ;;  %s2450_s17 = smov [#allocation11]  }
  0xab   : > { %1017 = vmatpush1.bf16.msra.mxu1 %v2023_v25  ;;  %v2053_v57 = vld [vmem:[#allocation7 + $0x1a0] ss:$16 sps:$4 sm:$0xff]   ;;  %v2054_v58 = vld [vmem:[#allocation7 + $0x1c4] ss:$16 sps:$4 sm:$0xff]  }
  0xac   : > { %1018 = vmatprep.subr.bf16.mxu1 %v2024_v26  ;;  %v2056_v59 = vld [vmem:[#allocation7 + $0x1c0] ss:$16 sps:$4 sm:$0xff]   ;;  %v2057_v60 = vld [vmem:[#allocation7 + $0x1e4] ss:$16 sps:$4 sm:$0xff]   ;;  %p2364_p5 = pnand %p2363_p10, %p2660_p3 }
  0xad   : > { %398 = vrot.lane.b32.xlu1 %v2771_v22, %s2448_s30  ;;  %438 = vrot.lane.b32.xlu0 %v2771_v22, %s2449_s9  ;;  %v2059_v61 = vld [vmem:[#allocation7 + $0x1e0] ss:$16 sps:$4 sm:$0xff]   ;;  %v2110_v4 = vld [vmem:[#allocation10] ss:$8 sps:$4 sm:$0xff]   ;;  %v2113_v9 = vld [vmem:[#allocation10 + $0x10] ss:$8 sps:$4 sm:$0xff]  }
  0xae   : > { %v2108_v63 = vld [vmem:[#allocation10 + $0x4] ss:$8 sps:$4 sm:$0xff]   ;;  %v2111_v5 = vld [vmem:[#allocation10 + $0x14] ss:$8 sps:$4 sm:$0xff]   ;;  %v2116_v18 = vld [vmem:[#allocation10 + $0x20] ss:$8 sps:$4 sm:$0xff]   ;;  %p2365_p7 = pneg %p2364_p5 }
  0xaf   : > { %1019 = vmatpush1.bf16.msra.mxu1 %v2026_v27  ;;  %1536 = vmatprep.subr.bf16.mxu0 %v2108_v63  ;;  %v2114_v10 = vld [vmem:[#allocation10 + $0x24] ss:$8 sps:$4 sm:$0xff]   ;;  %v2117_v23 = vld [vmem:[#allocation10 + $0x34] ss:$8 sps:$4 sm:$0xff]   ;;  %v2119_v32 = vld [vmem:[#allocation10 + $0x30] ss:$8 sps:$4 sm:$0xff]  }
  0xb0   : > { %1020 = vmatprep.subr.bf16.mxu1 %v2027_v28  ;;  %1537 = vmatpush1.bf16.msra.mxu0 %v2110_v4  ;;  %v375_v11 = vld [vmem:[#allocation5 + $0x90] sm:$0xff]  ;;  %v429_v28 = vmul.f32 %v425_v16, %v2749_v12  ;;  %v2122_v12 = vld [vmem:[#allocation10 + $0x40] ss:$8 sps:$4 sm:$0xff]  }
  0xb1   : > { %462 = vrot.lane.b32.xlu1 %v2743_v7, %s2448_s30  ;;  %460 = vrot.lane.b32.xlu0 %v2741_v6, %s2448_s30  ;;  %v424_v17 = vld [vmem:[#allocation5 + $0x30] sm:$0xff]  ;;  %v379_v0 = vmul.f32 %v375_v11, %v2743_v7  ;;  %v448_v16 = vld [vmem:[#allocation5 + $0x40] sm:$0xff] }
  0xb2   : > { %1538 = vmatprep.subr.bf16.mxu0 %v2111_v5  ;;  %v411_v20 = vld [vmem:[#allocation5 + $0x10] sm:$0xff]  ;;  %v428_v29 = vmul.f32 %v424_v17, %v2755_v13  ;;  %v2123_v13 = vld [vmem:[#allocation10 + $0x54] ss:$8 sps:$4 sm:$0xff]  }
  0xb3   : > { %1021 = vmatpush1.bf16.msra.mxu1 %v2029_v30  ;;  %v450_v36 = vld [vmem:[#allocation5 + $0x50] sm:$0xff] }
  0xb4   : > { %1022 = vmatprep.subr.bf16.mxu1 %v2030_v33  ;;  %1539 = vmatpush1.bf16.msra.mxu0 %v2113_v9 }
  0xb5   : > { %466 = vrot.lane.b32.xlu1 %v2736_v3, %s2448_s30  ;;  %464 = vrot.lane.b32.xlu0 %v2734_v2, %s2448_s30 }
  0xb6   : > { %1540 = vmatprep.subr.bf16.mxu0 %v2114_v10 }
  0xb7   : > { %1023 = vmatpush1.bf16.msra.mxu1 %v2032_v34 }
  0xb8   : > { %1024 = vmatprep.subr.bf16.mxu1 %v2033_v39  ;;  %1541 = vmatpush1.bf16.msra.mxu0 %v2116_v18  ;;  %v2128_v18 = vld [vmem:[#allocation10 + $0x60] ss:$8 sps:$4 sm:$0xff]  }
  0xb9   : > { %487 = vrot.lane.b32.xlu1 %v2743_v7, %s2449_s9  ;;  %485 = vrot.lane.b32.xlu0 %v2741_v6, %s2449_s9  ;;  %v2120_v7 = vld [vmem:[#allocation10 + $0x44] ss:$8 sps:$4 sm:$0xff]  }
  0xba   : > { %1542 = vmatprep.subr.bf16.mxu0 %v2117_v23  ;;  %v2129_v23 = vld [vmem:[#allocation10 + $0x74] ss:$8 sps:$4 sm:$0xff]  }
  0xbb   : > { %1025 = vmatpush1.bf16.msra.mxu1 %v2035_v40 }
  0xbc   : > { %1026 = vmatprep.subr.bf16.mxu1 %v2036_v42  ;;  %1543 = vmatpush1.bf16.msra.mxu0 %v2119_v32  ;;  %v473_v32 = vld [vmem:[#allocation5 + $0x60] sm:$0xff] }
  0xbd   : > { %491 = vrot.lane.b32.xlu1 %v2736_v3, %s2449_s9  ;;  %489 = vrot.lane.b32.xlu0 %v2734_v2, %s2449_s9 }
  0xbe   : > { %1544 = vmatprep.subr.bf16.mxu0 %v2120_v7  ;;  %v2132_v7 = vld [vmem:[#allocation10 + $0x84] ss:$8 sps:$4 sm:$0xff]  }
  0xbf   : > { %1027 = vmatpush1.bf16.msra.mxu1 %v2038_v46 }
  0xc0   : > { %1028 = vmatprep.subr.bf16.mxu1 %v2039_v47  ;;  %v373_v47 = vld [vmem:[#allocation5 + $0x80] sm:$0xff]  ;;  %1545 = vmatpush1.bf16.msra.mxu0 %v2122_v12 }
  0xc1   : > { %525 = vrot.lane.b32.xlu1 %v2801_v41, %s2448_s30  ;;  %523 = vrot.lane.b32.xlu0 %v2809_v44, %s2448_s30 }
  0xc2   : > { %1546 = vmatprep.subr.bf16.mxu0 %v2123_v13  ;;  %v2134_v13 = vld [vmem:[#allocation10 + $0x80] ss:$8 sps:$4 sm:$0xff]  }
  0xc3   : > { %1029 = vmatpush1.bf16.msra.mxu1 %v2041_v49  ;;  %v374_v49 = vld [vmem:[#allocation5 + $0x88] sm:$0xff] }
  0xc4   : > { %1030 = vmatprep.subr.bf16.mxu1 %v2042_v50  ;;  %v422_v50 = vld [vmem:[#allocation5 + $0x20] sm:$0xff] }
  0xc5   : > { %529 = vrot.lane.b32.xlu1 %v2813_v45, %s2448_s30  ;;  %527 = vrot.lane.b32.xlu0 %v2819_v48, %s2448_s30  ;;  %v426_v9 = vmul.f32 %v422_v50, %v2761_v15 }
  0xc7   : > { %1031 = vmatpush1.bf16.msra.mxu1 %v2044_v51  ;;  %v423_v51 = vld [vmem:[#allocation5 + $0x28] sm:$0xff] }
  0xc8   : > { %1032 = vmatprep.subr.bf16.mxu1 %v2045_v52  ;;  %v427_v10 = vmul.f32 %v423_v51, %v2771_v22 }
  0xc9   : > { %563 = vrot.lane.b32.xlu1 %v2801_v41, %s2449_s9  ;;  %561 = vrot.lane.b32.xlu0 %v2809_v44, %s2449_s9 }
  0xcb   : > { %1033 = vmatpush1.bf16.msra.mxu1 %v2047_v53 }
  0xcc   : > { %1034 = vmatprep.subr.bf16.mxu1 %v2048_v54  ;;  %v409_v54 = vld [vmem:[#allocation5] sm:$0xff] }
  0xcd   : > { %567 = vrot.lane.b32.xlu1 %v2813_v45, %s2449_s9  ;;  %565 = vrot.lane.b32.xlu0 %v2819_v48, %s2449_s9  ;;  %s2366_s9 = sshll.u32 %s2450_s17, 4  ;;  %s2367_s9 = int_to_ptr.vmem [resolvable:$false] %s2366_s9 }
  0xce   : > { %s2368_s13 = scalar_lea.vmem %s2367_s9, 1024  ;;  %p2369_p12 = scmp.lt.s32.totalorder %s2945_s12, %s2367_s9 }
  0xcf   : > { %1035 = vmatpush1.bf16.msra.mxu1 %v2050_v55  ;;  %v410_v55 = vld [vmem:[#allocation5 + $0x8] sm:$0xff]  ;;  %p2370_p1 = scmp.lt.s32.totalorder %s2368_s13, %s2362_s22 }
  0xd0   : > { %1036 = vmatprep.subr.bf16.mxu1 %v2051_v56  ;;  %v2125_v56 = vld [vmem:[#allocation10 + $0x50] ss:$8 sps:$4 sm:$0xff]  }
  0xd1   : > { %1547 = vmatpush1.bf16.msra.mxu0 %v2125_v56  ;;  %v498_v56 = vld [vmem:[#allocation5 + $0xa0] sm:$0xff]  ;;  %p2371_p2 = por %p2370_p1, %p2369_p12 }
  0xd3   : > { %1037 = vmatpush1.bf16.msra.mxu1 %v2053_v57  ;;  %p2372_p13 = pnand %p2371_p2, %p2365_p7 }
  0xd4   : > { %1038 = vmatprep.subr.bf16.mxu1 %v2054_v58 }
  0xd7   : > { %1039 = vmatpush1.bf16.msra.mxu1 %v2056_v59  ;;  %v378_v59 = vmul.f32 %v374_v49, %v2734_v2  ;;  %v449_v2 = vld [vmem:[#allocation5 + $0x48] sm:$0xff] }
  0xd8   : > { %1040 = vmatprep.subr.bf16.mxu1 %v2057_v60 }
  0xdb   : > { %1041 = vmatpush1.bf16.msra.mxu1 %v2059_v61  ;;  %v377_v61 = vmul.f32 %v373_v47, %v2741_v6  ;;  %v2135_v47 = vld [vmem:[#allocation10 + $0x94] ss:$8 sps:$4 sm:$0xff]  }
  0xdc   : > { %1053 = vmatprep.subr.bf16.mxu1 %v2062_v62  ;;  %v2126_v62 = vld [vmem:[#allocation10 + $0x64] ss:$8 sps:$4 sm:$0xff]  }
  0xdd   : > { %1548 = vmatprep.subr.bf16.mxu0 %v2126_v62 }
  0xde   : > { %1549 = vmatpush1.bf16.msra.mxu0 %v2128_v18  ;;  %v552_v18 = vld [vmem:[#allocation5 + $0xf8] sm:$0xff] }
  0xdf   : > { %1550 = vmatprep.subr.bf16.mxu0 %v2129_v23  ;;  %v550_v23 = vld [vmem:[#allocation5 + $0xe8] sm:$0xff] }
 0x113   : > { %v401_v19 = vpop.permute.xlu1 %400  ;;  %v397_v25 = vpop.permute.xlu0 %396 }
 0x114   : > { %v406_v26 = vsel %vm404_vm4, %v397_v25, %v401_v19  ;;  %v408_v27 = vsel %vm404_vm4, %v401_v19, %v397_v25 }
 0x115   : > { %v415_v30 = vmul.f32 %v411_v20, %v408_v27  ;;  %v416_v31 = vmul.f32 %v412_v21, %v406_v26  ;;  %v475_v26 = vld [vmem:[#allocation5 + $0x70] sm:$0xff]  ;;  %v476_v27 = vld [vmem:[#allocation5 + $0x78] sm:$0xff] }
 0x117   : > { %v437_v33 = vpop.permute.xlu1 %436  ;;  %v419_v34 = vadd.f32 %v415_v30, %v379_v0  ;;  %v420_v3 = vadd.f32 %v416_v31, %v380_v24  ;;  %v395_v35 = vpop.permute.xlu0 %394 }
 0x119   : > { %v432_v38 = vadd.f32 %v428_v29, %v419_v34  ;;  %v433_v39 = vadd.f32 %v429_v28, %v420_v3  ;;  %v2131_v28 = vld [vmem:[#allocation10 + $0x70] ss:$8 sps:$4 sm:$0xff]  }
 0x11a   : > { %1551 = vmatpush1.bf16.msra.mxu0 %v2131_v28 }
 0x11b   : > { %v441_v40 = vpop.permute.xlu1 %440  ;;  %v435_v46 = vpop.permute.xlu0 %434  ;;  %1552 = vmatprep.subr.bf16.mxu0 %v2132_v7 }
 0x11c   : > { %v444_v42 = vsel %vm442_vm5, %v437_v33, %v441_v40  ;;  %v446_v43 = vsel %vm442_vm5, %v441_v40, %v437_v33  ;;  %v474_v33 = vld [vmem:[#allocation5 + $0x68] sm:$0xff] }
 0x11d   : > { %v454_v52 = vmul.f32 %v450_v36, %v444_v42  ;;  %v455_v53 = vmul.f32 %v451_v37, %v446_v43 }
 0x11e   : > { %1553 = vmatpush1.bf16.msra.mxu0 %v2134_v13 }
 0x11f   : > { %v458_v57 = vadd.f32 %v454_v52, %v432_v38  ;;  %v459_v58 = vadd.f32 %v455_v53, %v433_v39  ;;  %v399_v60 = vpop.permute.xlu1 %398  ;;  %v439_v5 = vpop.permute.xlu0 %438  ;;  %v500_v52 = vld [vmem:[#allocation5 + $0xb0] sm:$0xff]  ;;  %v501_v53 = vld [vmem:[#allocation5 + $0xb8] sm:$0xff]  ;;  %1554 = vmatprep.subr.bf16.mxu0 %v2135_v47 }
 0x120   : > { %v405_v63 = vsel %vm404_vm4, %v395_v35, %v399_v60  ;;  %v407_v4 = vsel %vm404_vm4, %v399_v60, %v395_v35  ;;  %v443_v6 = vsel %vm442_vm5, %v435_v46, %v439_v5  ;;  %v445_v17 = vsel %vm442_vm5, %v439_v5, %v435_v46 }
 0x121   : > { %v413_v11 = vmul.f32 %v409_v54, %v407_v4  ;;  %v414_v14 = vmul.f32 %v410_v55, %v405_v63  ;;  %v452_v24 = vmul.f32 %v448_v16, %v443_v6  ;;  %v453_v25 = vmul.f32 %v449_v2, %v445_v17  ;;  %v2137_v54 = vld [vmem:[#allocation10 + $0x90] ss:$8 sps:$4 sm:$0xff]  }
 0x122   : > { %1555 = vmatpush1.bf16.msra.mxu0 %v2137_v54  ;;  %v551_v17 = vld [vmem:[#allocation5 + $0xf0] sm:$0xff] }
 0x123   : > { %v417_v19 = vadd.f32 %v413_v11, %v377_v61  ;;  %v418_v20 = vadd.f32 %v414_v14, %v378_v59  ;;  %v463_v21 = vpop.permute.xlu1 %462  ;;  %v461_v15 = vpop.permute.xlu0 %460  ;;  %v499_v59 = vld [vmem:[#allocation5 + $0xa8] sm:$0xff] }
 0x125   : > { %v431_v0 = vadd.f32 %v427_v10, %v418_v20  ;;  %v430_v22 = vadd.f32 %v426_v9, %v417_v19  ;;  %v549_v19 = vld [vmem:[#allocation5 + $0xe0] sm:$0xff]  ;;  %v538_v20 = vld [vmem:[#allocation5 + $0xd0] sm:$0xff] }
 0x127   : > { %v456_v29 = vadd.f32 %v452_v24, %v430_v22  ;;  %v457_v30 = vadd.f32 %v453_v25, %v431_v0  ;;  %v467_v31 = vpop.permute.xlu1 %466  ;;  %v465_v35 = vpop.permute.xlu0 %464  ;;  %v536_v0 = vld [vmem:[#allocation5 + $0xc0] sm:$0xff]  ;;  %v537_v22 = vld [vmem:[#allocation5 + $0xc8] sm:$0xff]  ;;  %v555_v24 = vmul.f32 %v551_v17, %v2801_v41  ;;  %v556_v25 = vmul.f32 %v552_v18, %v2813_v45 }
 0x128   : > { %v469_v34 = vsel %vm404_vm4, %v463_v21, %v467_v31  ;;  %v471_v3 = vsel %vm404_vm4, %v467_v31, %v463_v21  ;;  %v468_v38 = vsel %vm404_vm4, %v461_v15, %v465_v35  ;;  %v470_v39 = vsel %vm404_vm4, %v465_v35, %v461_v15  ;;  %v539_v21 = vld [vmem:[#allocation5 + $0xd8] sm:$0xff] }
 0x129   : > { %v479_v36 = vmul.f32 %v475_v26, %v471_v3  ;;  %v480_v37 = vmul.f32 %v476_v27, %v469_v34  ;;  %v477_v12 = vmul.f32 %v473_v32, %v470_v39  ;;  %v478_v40 = vmul.f32 %v474_v33, %v468_v38  ;;  %v2063_v17 = vld [vmem:[#allocation7 + $0x28] ss:$16 sps:$4 sm:$0xff]   ;;  %v2068_v18 = vld [vmem:[#allocation7 + $0x4c] ss:$16 sps:$4 sm:$0xff]  }
 0x12a   : > { %v553_v33 = vmul.f32 %v549_v19, %v2809_v44  ;;  %v554_v41 = vmul.f32 %v550_v23, %v2819_v48  ;;  %v2891_v39 = vsub.s32 0, %v2731_v1  ;;  %v586_v44 = vld [vmem:[%s2999_s2] sm:$0x3]  ;;  %v576_v48 = vld [vmem:[#allocation5 + $0x110] sm:$0xff]  ;;  %v2066_v19 = vld [vmem:[#allocation7 + $0x48] ss:$16 sps:$4 sm:$0xff]  }
 0x12b   : > { %v483_v42 = vadd.f32 %v479_v36, %v458_v57  ;;  %v484_v43 = vadd.f32 %v480_v37, %v459_v58  ;;  %v488_v46 = vpop.permute.xlu1 %487  ;;  %v481_v49 = vadd.f32 %v477_v12, %v456_v29  ;;  %v482_v50 = vadd.f32 %v478_v40, %v457_v30  ;;  %v486_v51 = vpop.permute.xlu0 %485  ;;  %v2074_v23 = vld [vmem:[#allocation7 + $0x8c] ss:$16 sps:$4 sm:$0xff]  }
 0x12c   : > { %v2894_v12 = vsub.s32 1, %v2731_v1  ;;  %v591_v54 = vrot.slane %v586_v44, %v2891_v39 }
 0x12f   : > { %v492_v55 = vpop.permute.xlu1 %491  ;;  %v490_v58 = vpop.permute.xlu0 %489 }
 0x130   : > { %v494_v60 = vsel %vm442_vm5, %v488_v46, %v492_v55  ;;  %v496_v57 = vsel %vm442_vm5, %v492_v55, %v488_v46  ;;  %v493_v63 = vsel %vm442_vm5, %v486_v51, %v490_v58  ;;  %v495_v4 = vsel %vm442_vm5, %v490_v58, %v486_v51 }
 0x131   : > { %v504_v61 = vmul.f32 %v500_v52, %v494_v60  ;;  %v505_v62 = vmul.f32 %v501_v53, %v496_v57  ;;  %v502_v5 = vmul.f32 %v498_v56, %v493_v63  ;;  %v503_v9 = vmul.f32 %v499_v59, %v495_v4 }
 0x132   : > { %v595_v55 = vrot.slane %v586_v44, %v2894_v12  ;;  %v2140_v44 = vld [vmem:[#allocation10 + $0xa0] ss:$8 sps:$4 sm:$0xff]  }
 0x133   : > { %v508_v10 = vadd.f32 %v504_v61, %v483_v42  ;;  %v509_v11 = vadd.f32 %v505_v62, %v484_v43  ;;  %v526_v14 = vpop.permute.xlu1 %525  ;;  %v506_v16 = vadd.f32 %v502_v5, %v481_v49  ;;  %v507_v2 = vadd.f32 %v503_v9, %v482_v50  ;;  %v524_v6 = vpop.permute.xlu0 %523  ;;  %v577_v42 = vld [vmem:[#allocation5 + $0x118] sm:$0xff]  ;;  %v574_v49 = vld [vmem:[#allocation5 + $0x100] sm:$0xff]  ;;  %v575_v50 = vld [vmem:[#allocation5 + $0x108] sm:$0xff] }
 0x137   : > { %v530_v15 = vpop.permute.xlu1 %529  ;;  %v528_v28 = vpop.permute.xlu0 %527 }
 0x138   : > { %v532_v26 = vsel %vm404_vm4, %v526_v14, %v530_v15  ;;  %v534_v27 = vsel %vm404_vm4, %v530_v15, %v526_v14  ;;  %v531_v31 = vsel %vm404_vm4, %v524_v6, %v528_v28  ;;  %v533_v32 = vsel %vm404_vm4, %v528_v28, %v524_v6  ;;  %v2065_v6 = vld [vmem:[#allocation7 + $0x2c] ss:$16 sps:$4 sm:$0xff]   ;;  %v2072_v15 = vld [vmem:[#allocation7 + $0x88] ss:$16 sps:$4 sm:$0xff]  }
 0x139   : > { %v542_v29 = vmul.f32 %v538_v20, %v534_v27  ;;  %v543_v30 = vmul.f32 %v539_v21, %v532_v26  ;;  %v540_v45 = vmul.f32 %v536_v0, %v533_v32  ;;  %v541_v7 = vmul.f32 %v537_v22, %v531_v31  ;;  %v2071_v20 = vld [vmem:[#allocation7 + $0x6c] ss:$16 sps:$4 sm:$0xff]   ;;  %v2069_v21 = vld [vmem:[#allocation7 + $0x68] ss:$16 sps:$4 sm:$0xff]  }
 0x13a   : > { %v2077_v0 = vld [vmem:[#allocation7 + $0xac] ss:$16 sps:$4 sm:$0xff]   ;;  %v2075_v22 = vld [vmem:[#allocation7 + $0xa8] ss:$16 sps:$4 sm:$0xff]  }
 0x13b   : > { %v546_v34 = vadd.f32 %v542_v29, %v508_v10  ;;  %v547_v3 = vadd.f32 %v543_v30, %v509_v11  ;;  %v564_v35 = vpop.permute.xlu1 %563  ;;  %v544_v36 = vadd.f32 %v540_v45, %v506_v16  ;;  %v545_v37 = vadd.f32 %v541_v7, %v507_v2  ;;  %v562_v38 = vpop.permute.xlu0 %561  ;;  %v2060_v2 = vld [vmem:[#allocation7 + $0x8] ss:$16 sps:$4 sm:$0xff]   ;;  %v2083_v26 = vld [vmem:[#allocation7 + $0xec] ss:$16 sps:$4 sm:$0xff]  }
 0x13c   : > { %v2081_v27 = vld [vmem:[#allocation7 + $0xe8] ss:$16 sps:$4 sm:$0xff]   ;;  %v2086_v28 = vld [vmem:[#allocation7 + $0x10c] ss:$16 sps:$4 sm:$0xff]  }
 0x13d   : > { %v559_v40 = vadd.f32 %v555_v24, %v546_v34  ;;  %v560_v13 = vadd.f32 %v556_v25, %v547_v3  ;;  %v558_v43 = vadd.f32 %v554_v41, %v545_v37  ;;  %v557_v46 = vadd.f32 %v553_v33, %v544_v36  ;;  %v2080_v24 = vld [vmem:[#allocation7 + $0xcc] ss:$16 sps:$4 sm:$0xff]   ;;  %v2078_v25 = vld [vmem:[#allocation7 + $0xc8] ss:$16 sps:$4 sm:$0xff]  }
 0x13e   : > { %v2084_v29 = vld [vmem:[#allocation7 + $0x108] ss:$16 sps:$4 sm:$0xff]   ;;  %v2089_v30 = vld [vmem:[#allocation7 + $0x12c] ss:$16 sps:$4 sm:$0xff]  }
 0x13f   : > { %v568_v47 = vpop.permute.xlu1 %567  ;;  %v566_v53 = vpop.permute.xlu0 %565  ;;  %v2087_v31 = vld [vmem:[#allocation7 + $0x128] ss:$16 sps:$4 sm:$0xff]   ;;  %v2092_v32 = vld [vmem:[#allocation7 + $0x14c] ss:$16 sps:$4 sm:$0xff]  }
 0x140   : > { %v570_v51 = vsel %vm442_vm5, %v564_v35, %v568_v47  ;;  %v572_v52 = vsel %vm442_vm5, %v568_v47, %v564_v35  ;;  %v569_v60 = vsel %vm442_vm5, %v562_v38, %v566_v53  ;;  %v571_v57 = vsel %vm442_vm5, %v566_v53, %v562_v38  ;;  %v2090_v33 = vld [vmem:[#allocation7 + $0x148] ss:$16 sps:$4 sm:$0xff]   ;;  %v2095_v41 = vld [vmem:[#allocation7 + $0x16c] ss:$16 sps:$4 sm:$0xff]  }
 0x141   : > { %v580_v56 = vmul.f32 %v576_v48, %v570_v51  ;;  %v581_v59 = vmul.f32 %v577_v42, %v572_v52  ;;  %v578_v58 = vmul.f32 %v574_v49, %v569_v60  ;;  %v579_v61 = vmul.f32 %v575_v50, %v571_v57  ;;  %v2093_v45 = vld [vmem:[#allocation7 + $0x168] ss:$16 sps:$4 sm:$0xff]   ;;  %v2098_v7 = vld [vmem:[#allocation7 + $0x18c] ss:$16 sps:$4 sm:$0xff]  }
 0x142   : > { %v2096_v34 = vld [vmem:[#allocation7 + $0x188] ss:$16 sps:$4 sm:$0xff]   ;;  %v2101_v3 = vld [vmem:[#allocation7 + $0x1ac] ss:$16 sps:$4 sm:$0xff]  }
 0x143   : > { %v584_v62 = vadd.f32 %v580_v56, %v559_v40  ;;  %v585_v63 = vadd.f32 %v581_v59, %v560_v13  ;;  %v582_v4 = vadd.f32 %v578_v58, %v557_v46  ;;  %v583_v5 = vadd.f32 %v579_v61, %v558_v43  ;;  %v2099_v35 = vld [vmem:[#allocation7 + $0x1a8] ss:$16 sps:$4 sm:$0xff]   ;;  %v2104_v36 = vld [vmem:[#allocation7 + $0x1cc] ss:$16 sps:$4 sm:$0xff]  }
 0x144   : > { %v2102_v37 = vld [vmem:[#allocation7 + $0x1c8] ss:$16 sps:$4 sm:$0xff]   ;;  %v2107_v38 = vld [vmem:[#allocation7 + $0x1ec] ss:$16 sps:$4 sm:$0xff]  }
 0x145   : > { %v2909_v9 = vadd.f32 %v595_v55, %v585_v63  ;;  %v2911_v10 = vadd.f32 %v591_v54, %v584_v62  ;;  %v2913_v11 = vadd.f32 %v595_v55, %v583_v5  ;;  %v2915_v14 = vadd.f32 %v591_v54, %v582_v4  ;;  %v2105_v40 = vld [vmem:[#allocation7 + $0x1e8] ss:$16 sps:$4 sm:$0xff]   ;;  %v2143_v42 = vld [vmem:[#allocation10 + $0xb0] ss:$8 sps:$4 sm:$0xff]   ;;  %v2146_v46 = vld [vmem:[#allocation10 + $0xc0] ss:$8 sps:$4 sm:$0xff]  }
 0x146   : > { %v2138_v13 = vld [vmem:[#allocation10 + $0xa4] ss:$8 sps:$4 sm:$0xff]   ;;  %v2141_v48 = vld [vmem:[#allocation10 + $0xb4] ss:$8 sps:$4 sm:$0xff]   ;;  %v2149_v49 = vld [vmem:[#allocation10 + $0xd0] ss:$8 sps:$4 sm:$0xff]  }
 0x147   : > { %v603_v16 = vpack.c.bf16 %v2909_v9, %v2913_v11  ;;  %v2921_v8 = vpack.c.bf16 %v2911_v10, %v2915_v14  ;;  %1556 = vmatprep.subr.bf16.mxu0 %v2138_v13  ;;  %v2144_v43 = vld [vmem:[#allocation10 + $0xc4] ss:$8 sps:$4 sm:$0xff]   ;;  %v2147_v47 = vld [vmem:[#allocation10 + $0xd4] ss:$8 sps:$4 sm:$0xff]   ;;  %v2152_v51 = vld [vmem:[#allocation10 + $0xe0] ss:$8 sps:$4 sm:$0xff]  }
 0x148   : > { %1557 = vmatpush1.bf16.msra.mxu0 %v2140_v44  ;;  %v2150_v50 = vld [vmem:[#allocation10 + $0xe4] ss:$8 sps:$4 sm:$0xff]   ;;  %v2153_v52 = vld [vmem:[#allocation10 + $0xf4] ss:$8 sps:$4 sm:$0xff]   ;;  %v2155_v53 = vld [vmem:[#allocation10 + $0xf0] ss:$8 sps:$4 sm:$0xff]  }
 0x149   : > { %1042 = vmatprep.mubr.bf16.mxu1 %v603_v16  ;;  %1558 = vmatprep.subr.bf16.mxu0 %v2141_v48  ;;  %v2158_v54 = vld [vmem:[#allocation10 + $0x104] ss:$8 sps:$4 sm:$0xff]   ;;  %v2925_v55 = vld [vmem:[#allocation8] sm:$0xf]  ;;  %v2174_v44 = vld [vmem:[#allocation10 + $0x160] ss:$8 sps:$4 sm:$0xff]  }
 0x14a   : > { %1043 = vmatmul.mubr.bf16.vlgmr.msra.gmra.mrb[0].mxu1 %v2921_v8  ;;  %v673_v56 = vrot.slane %v2925_v55, %v2891_v39  ;;  %v677_v59 = vrot.slane %v2925_v55, %v2894_v12  ;;  %v2176_v13 = vld [vmem:[#allocation10 + $0x164] ss:$8 sps:$4 sm:$0xff]   ;;  %v2179_v48 = vld [vmem:[#allocation10 + $0x174] ss:$8 sps:$4 sm:$0xff]  }
 0x14b   : > { %1054 = vmatpush1.bf16.msra.mxu1 %v2060_v2  ;;  %1085 = vmatprep.mubr.bf16.mxu1 %v603_v16 }
 0x14c   : > { %1055 = vmatprep.subr.bf16.mxu1 %v2065_v6  ;;  %1559 = vmatpush1.bf16.msra.mxu0 %v2143_v42  ;;  %v2177_v42 = vld [vmem:[#allocation10 + $0x170] ss:$8 sps:$4 sm:$0xff]  }
 0x14d   : > { %1560 = vmatprep.subr.bf16.mxu0 %v2144_v43  ;;  %v2182_v43 = vld [vmem:[#allocation10 + $0x184] ss:$8 sps:$4 sm:$0xff]  }
 0x14f   : > { %1056 = vmatpush1.bf16.msra.mxu1 %v2063_v17 }
 0x150   : > { %1057 = vmatprep.subr.bf16.mxu1 %v2068_v18  ;;  %1561 = vmatpush1.bf16.msra.mxu0 %v2146_v46  ;;  %v2180_v46 = vld [vmem:[#allocation10 + $0x180] ss:$8 sps:$4 sm:$0xff]  }
 0x151   : > { %1562 = vmatprep.subr.bf16.mxu0 %v2147_v47  ;;  %v2185_v47 = vld [vmem:[#allocation10 + $0x194] ss:$8 sps:$4 sm:$0xff]  }
 0x153   : > { %1058 = vmatpush1.bf16.msra.mxu1 %v2066_v19 }
 0x154   : > { %1059 = vmatprep.subr.bf16.mxu1 %v2071_v20  ;;  %1563 = vmatpush1.bf16.msra.mxu0 %v2149_v49  ;;  %v680_v49 = vsub.s32 2, %v2731_v1 }
 0x155   : > { %1564 = vmatprep.subr.bf16.mxu0 %v2150_v50  ;;  %v684_v50 = vsub.s32 3, %v2731_v1 }
 0x157   : > { %1060 = vmatpush1.bf16.msra.mxu1 %v2069_v21 }
 0x158   : > { %1061 = vmatprep.subr.bf16.mxu1 %v2074_v23  ;;  %1565 = vmatpush1.bf16.msra.mxu0 %v2152_v51  ;;  %v2183_v51 = vld [vmem:[#allocation10 + $0x190] ss:$8 sps:$4 sm:$0xff]  }
 0x159   : > { %1566 = vmatprep.subr.bf16.mxu0 %v2153_v52  ;;  %v2188_v52 = vld [vmem:[#allocation10 + $0x1a4] ss:$8 sps:$4 sm:$0xff]  }
 0x15b   : > { %1062 = vmatpush1.bf16.msra.mxu1 %v2072_v15 }
 0x15c   : > { %1063 = vmatprep.subr.bf16.mxu1 %v2077_v0  ;;  %1567 = vmatpush1.bf16.msra.mxu0 %v2155_v53  ;;  %v681_v53 = vrot.slane %v2925_v55, %v680_v49 }
 0x15d   : > { %1579 = vmatprep.subr.bf16.mxu0 %v2158_v54  ;;  %v685_v54 = vrot.slane %v2925_v55, %v684_v50 }
 0x15f   : > { %1064 = vmatpush1.bf16.msra.mxu1 %v2075_v22 }
 0x160   : > { %1065 = vmatprep.subr.bf16.mxu1 %v2080_v24 }
 0x163   : > { %1066 = vmatpush1.bf16.msra.mxu1 %v2078_v25 }
 0x164   : > { %1067 = vmatprep.subr.bf16.mxu1 %v2083_v26 }
 0x167   : > { %1068 = vmatpush1.bf16.msra.mxu1 %v2081_v27 }
 0x168   : > { %1069 = vmatprep.subr.bf16.mxu1 %v2086_v28 }
 0x16b   : > { %1070 = vmatpush1.bf16.msra.mxu1 %v2084_v29 }
 0x16c   : > { %1071 = vmatprep.subr.bf16.mxu1 %v2089_v30 }
 0x16f   : > { %1072 = vmatpush1.bf16.msra.mxu1 %v2087_v31 }
 0x170   : > { %1073 = vmatprep.subr.bf16.mxu1 %v2092_v32 }
 0x173   : > { %1074 = vmatpush1.bf16.msra.mxu1 %v2090_v33  ;;  %v2156_v33 = vld [vmem:[#allocation10 + $0x100] ss:$8 sps:$4 sm:$0xff]  }
 0x174   : > { %1075 = vmatprep.subr.bf16.mxu1 %v2095_v41  ;;  %v2161_v41 = vld [vmem:[#allocation10 + $0x114] ss:$8 sps:$4 sm:$0xff]  }
 0x177   : > { %1076 = vmatpush1.bf16.msra.mxu1 %v2093_v45  ;;  %v2159_v45 = vld [vmem:[#allocation10 + $0x110] ss:$8 sps:$4 sm:$0xff]  }
 0x178   : > { %1077 = vmatprep.subr.bf16.mxu1 %v2098_v7  ;;  %v2164_v7 = vld [vmem:[#allocation10 + $0x124] ss:$8 sps:$4 sm:$0xff]  }
 0x17b   : > { %1078 = vmatpush1.bf16.msra.mxu1 %v2096_v34  ;;  %v2162_v34 = vld [vmem:[#allocation10 + $0x120] ss:$8 sps:$4 sm:$0xff]  }
 0x17c   : > { %1079 = vmatprep.subr.bf16.mxu1 %v2101_v3  ;;  %v2167_v3 = vld [vmem:[#allocation10 + $0x134] ss:$8 sps:$4 sm:$0xff]  }
 0x17f   : > { %1080 = vmatpush1.bf16.msra.mxu1 %v2099_v35  ;;  %v2165_v35 = vld [vmem:[#allocation10 + $0x130] ss:$8 sps:$4 sm:$0xff]  }
 0x180   : > { %1081 = vmatprep.subr.bf16.mxu1 %v2104_v36  ;;  %v2170_v36 = vld [vmem:[#allocation10 + $0x144] ss:$8 sps:$4 sm:$0xff]  }
 0x183   : > { %1082 = vmatpush1.bf16.msra.mxu1 %v2102_v37  ;;  %v2168_v37 = vld [vmem:[#allocation10 + $0x140] ss:$8 sps:$4 sm:$0xff]  }
 0x184   : > { %1083 = vmatprep.subr.bf16.mxu1 %v2107_v38  ;;  %v2173_v38 = vld [vmem:[#allocation10 + $0x154] ss:$8 sps:$4 sm:$0xff]  }
 0x187   : > { %1084 = vmatpush1.bf16.msra.mxu1 %v2105_v40  ;;  %v2171_v40 = vld [vmem:[#allocation10 + $0x150] ss:$8 sps:$4 sm:$0xff]  }
 0x18a   : > { %1086 = vmatmul.mubr.bf16.vlgmr.msra.gmra.mrb[4].mxu1 %v2921_v8 }
 0x21d   : > { %v1044_v60 = vpop.f32.mrb[0].mxu1 }
 0x21e   : > { %v1045_v57 = vadd.f32 %v1044_v60, %v673_v56  ;;  %v1046_v58 = vpop.f32.mrb[1].mxu1  ;;  %v2191_v60 = vld [vmem:[#allocation10 + $0x1b4] ss:$8 sps:$4 sm:$0xff]  }
 0x21f   : > { %v1047_v61 = vadd.f32 %v1046_v58, %v677_v59  ;;  %v1048_v62 = vpop.f32.mrb[2].mxu1 }
 0x220   : > { %v1104_v63 = vmul.f32 0.70710677, %v1045_v57  ;;  %v1049_v4 = vadd.f32 %v1048_v62, %v673_v56  ;;  %v1050_v5 = vpop.f32.mrb[3].mxu1  ;;  %v1096_v15 = vmul.f32 0.5, %v1045_v57  ;;  %v2186_v56 = vld [vmem:[#allocation10 + $0x1a0] ss:$8 sps:$4 sm:$0xff]  }
 0x221   : > { %v1105_v16 = vmul.f32 0.70710677, %v1047_v61  ;;  %v1051_v2 = vadd.f32 %v1050_v5, %v677_v59  ;;  %v1097_v24 = vmul.f32 0.5, %v1047_v61  ;;  %v2189_v5 = vld [vmem:[#allocation10 + $0x1b0] ss:$8 sps:$4 sm:$0xff]  }
 0x222   : > { %2204 = verf.f32 %v1104_v63  ;;  %v1108_v8 = vmul.f32 0.70710677, %v1049_v4  ;;  %v1100_v0 = vmul.f32 0.5, %v1049_v4 }
 0x223   : > { %2206 = verf.f32 %v1105_v16  ;;  %v1109_v6 = vmul.f32 0.70710677, %v1051_v2  ;;  %v1101_v25 = vmul.f32 0.5, %v1051_v2 }
 0x224   : > { %2208 = verf.f32 %v1108_v8  ;;  %v2194_v8 = vld [vmem:[#allocation10 + $0x1c4] ss:$8 sps:$4 sm:$0xff]  }
 0x225   : > { %2210 = verf.f32 %v1109_v6 }
 0x22c   : > { %v2205_v17 = vpop.eup %2204 }
 0x22d   : > { %v2207_v18 = vpop.eup %2206  ;;  %v1120_v19 = vadd.f32 1.0, %v2205_v17  ;;  %v2192_v17 = vld [vmem:[#allocation10 + $0x1c0] ss:$8 sps:$4 sm:$0xff]  }
 0x22e   : > { %v2209_v20 = vpop.eup %2208  ;;  %v1121_v21 = vadd.f32 1.0, %v2207_v18  ;;  %v2197_v18 = vld [vmem:[#allocation10 + $0x1d4] ss:$8 sps:$4 sm:$0xff]  }
 0x22f   : > { %v2211_v23 = vpop.eup %2210  ;;  %v1124_v22 = vadd.f32 1.0, %v2209_v20  ;;  %v1128_v27 = vmul.f32 %v1120_v19, %v1096_v15  ;;  %v2195_v19 = vld [vmem:[#allocation10 + $0x1d0] ss:$8 sps:$4 sm:$0xff]   ;;  %v2200_v20 = vld [vmem:[#allocation10 + $0x1e4] ss:$8 sps:$4 sm:$0xff]  }
 0x230   : > { %v1125_v26 = vadd.f32 1.0, %v2211_v23  ;;  %v1129_v29 = vmul.f32 %v1121_v21, %v1097_v24  ;;  %v2198_v23 = vld [vmem:[#allocation10 + $0x1e0] ss:$8 sps:$4 sm:$0xff]  }
 0x231   : > { %v1132_v28 = vmul.f32 %v1124_v22, %v1100_v0  ;;  %v2203_v22 = vld [vmem:[#allocation10 + $0x1f4] ss:$8 sps:$4 sm:$0xff]  }
 0x232   : > { %v1133_v30 = vmul.f32 %v1125_v26, %v1101_v25 }
 0x233   : > { %v1136_v31 = vpack.c.bf16 %v1132_v28, %v1128_v27 }
 0x234   : > { %v1137_v32 = vpack.c.bf16 %v1133_v30, %v1129_v29 }
 0x236   : > { %1568 = vmatprep.mubr.bf16.mxu0 %v1137_v32 }
 0x237   : > { %1569 = vmatmul.mubr.bf16.vlgmr.msra.gmra.mrb[0].mxu0 %v1136_v31 }
 0x238   : > { %1580 = vmatpush1.bf16.msra.mxu0 %v2156_v33  ;;  %v2201_v33 = vld [vmem:[#allocation10 + $0x1f0] ss:$8 sps:$4 sm:$0xff]  }
 0x239   : > { %1581 = vmatprep.subr.bf16.mxu0 %v2161_v41 }
 0x23c   : > { %1582 = vmatpush1.bf16.msra.mxu0 %v2159_v45 }
 0x23d   : > { %1583 = vmatprep.subr.bf16.mxu0 %v2164_v7 }
 0x240   : > { %1584 = vmatpush1.bf16.msra.mxu0 %v2162_v34 }
 0x241   : > { %1585 = vmatprep.subr.bf16.mxu0 %v2167_v3 }
 0x244   : > { %1586 = vmatpush1.bf16.msra.mxu0 %v2165_v35 }
 0x245   : > { %1587 = vmatprep.subr.bf16.mxu0 %v2170_v36  ;;  %v1204_v36 = vld [vmem:[%s3003_s6] sm:$0x3] }
 0x248   : > { %1588 = vmatpush1.bf16.msra.mxu0 %v2168_v37  ;;  %v1209_v37 = vrot.slane %v1204_v36, %v2891_v39 }
 0x249   : > { %1589 = vmatprep.subr.bf16.mxu0 %v2173_v38  ;;  %v1213_v38 = vrot.slane %v1204_v36, %v2894_v12 }
 0x24c   : > { %1590 = vmatpush1.bf16.msra.mxu0 %v2171_v40 }
 0x24d   : > { %1591 = vmatprep.subr.bf16.mxu0 %v2176_v13 }
 0x250   : > { %1592 = vmatpush1.bf16.msra.mxu0 %v2174_v44 }
 0x251   : > { %1593 = vmatprep.subr.bf16.mxu0 %v2179_v48 }
 0x254   : > { %1594 = vmatpush1.bf16.msra.mxu0 %v2177_v42 }
 0x255   : > { %1595 = vmatprep.subr.bf16.mxu0 %v2182_v43 }
 0x258   : > { %1596 = vmatpush1.bf16.msra.mxu0 %v2180_v46 }
 0x259   : > { %1597 = vmatprep.subr.bf16.mxu0 %v2185_v47 }
 0x25c   : > { %1598 = vmatpush1.bf16.msra.mxu0 %v2183_v51 }
 0x25d   : > { %v1087_v59 = vpop.f32.mrb[4].mxu1  ;;  %1599 = vmatprep.subr.bf16.mxu0 %v2188_v52 }
 0x25e   : > { %v1088_v57 = vadd.f32 %v1087_v59, %v681_v53  ;;  %v1089_v58 = vpop.f32.mrb[5].mxu1 }
 0x25f   : > { %v1090_v61 = vadd.f32 %v1089_v58, %v685_v54  ;;  %v1091_v62 = vpop.f32.mrb[6].mxu1 }
 0x260   : > { %v1106_v63 = vmul.f32 0.70710677, %v1088_v57  ;;  %v1092_v4 = vadd.f32 %v1091_v62, %v681_v53  ;;  %v1093_v1 = vpop.f32.mrb[7].mxu1  ;;  %1600 = vmatpush1.bf16.msra.mxu0 %v2186_v56  ;;  %v1098_v27 = vmul.f32 0.5, %v1088_v57 }
 0x261   : > { %v1107_v16 = vmul.f32 0.70710677, %v1090_v61  ;;  %v1094_v2 = vadd.f32 %v1093_v1, %v685_v54  ;;  %1601 = vmatprep.subr.bf16.mxu0 %v2191_v60  ;;  %v1099_v30 = vmul.f32 0.5, %v1090_v61 }
 0x262   : > { %2212 = verf.f32 %v1106_v63  ;;  %v1110_v55 = vmul.f32 0.70710677, %v1092_v4  ;;  %v1102_v28 = vmul.f32 0.5, %v1092_v4 }
 0x263   : > { %2214 = verf.f32 %v1107_v16  ;;  %v1111_v6 = vmul.f32 0.70710677, %v1094_v2  ;;  %v1103_v31 = vmul.f32 0.5, %v1094_v2 }
 0x264   : > { %2216 = verf.f32 %v1110_v55  ;;  %1602 = vmatpush1.bf16.msra.mxu0 %v2189_v5 }
 0x265   : > { %2218 = verf.f32 %v1111_v6  ;;  %1603 = vmatprep.subr.bf16.mxu0 %v2194_v8 }
 0x268   : > { %1604 = vmatpush1.bf16.msra.mxu0 %v2192_v17 }
 0x269   : > { %1605 = vmatprep.subr.bf16.mxu0 %v2197_v18 }
 0x26c   : > { %v2213_v21 = vpop.eup %2212  ;;  %1606 = vmatpush1.bf16.msra.mxu0 %v2195_v19 }
 0x26d   : > { %v2215_v15 = vpop.eup %2214  ;;  %v1122_v0 = vadd.f32 1.0, %v2213_v21  ;;  %1607 = vmatprep.subr.bf16.mxu0 %v2200_v20 }
 0x26e   : > { %v2217_v24 = vpop.eup %2216  ;;  %v1123_v25 = vadd.f32 1.0, %v2215_v15 }
 0x26f   : > { %v2219_v26 = vpop.eup %2218  ;;  %v1126_v29 = vadd.f32 1.0, %v2217_v24  ;;  %v1130_v41 = vmul.f32 %v1122_v0, %v1098_v27 }
 0x270   : > { %v1127_v32 = vadd.f32 1.0, %v2219_v26  ;;  %1608 = vmatpush1.bf16.msra.mxu0 %v2198_v23  ;;  %v1131_v7 = vmul.f32 %v1123_v25, %v1099_v30 }
 0x271   : > { %v1134_v45 = vmul.f32 %v1126_v29, %v1102_v28  ;;  %1609 = vmatprep.subr.bf16.mxu0 %v2203_v22 }
 0x272   : > { %v1135_v34 = vmul.f32 %v1127_v32, %v1103_v31 }
 0x273   : > { %v1138_v3 = vpack.c.bf16 %v1134_v45, %v1130_v41 }
 0x274   : > { %1610 = vmatpush1.bf16.msra.mxu0 %v2201_v33  ;;  %v1139_v35 = vpack.c.bf16 %v1135_v34, %v1131_v7 }
 0x276   : > { %1611 = vmatprep.mubr.bf16.mxu0 %v1139_v35 }
 0x277   : > { %1612 = vmatmul.mubr.bf16.vlgmr.msra.gmra.mrb[0].mxu0 %v1138_v3 }
 0x34a   : > { %v1613_v40 = vpop.f32.mrb[0].mxu0 }
 0x34b   : > { %v1909_v13 = vadd.f32 %v1613_v40, %v1209_v37  ;;  %v1615_v44 = vpop.f32.mrb[1].mxu0 }
 0x34c   : > { %v1910_v48 = vadd.f32 %v1615_v44, %v1213_v38  ;;  %v1617_v42 = vpop.f32.mrb[2].mxu0 }
 0x34d   : > { %v1622_v43 = vadd.f32 %v1909_v13, %v2915_v14  ;;  %v1911_v46 = vadd.f32 %v1617_v42, %v1209_v37  ;;  %v1619_v47 = vpop.f32.mrb[3].mxu0 }
 0x34e   : > { %v1623_v49 = vadd.f32 %v1910_v48, %v2913_v11  ;;  %v1912_v39 = vadd.f32 %v1619_v47, %v1213_v38 }
 0x34f   : > { %1626 = vst [vmem:[%s352_s20] sm:$0xff] %v1622_v43  ;;  %v1624_v12 = vadd.f32 %v1911_v46, %v2911_v10 }
 0x350   : > { %1627 = vst [vmem:[%s352_s20 + $0x8] sm:$0xff] %v1623_v49  ;;  %v1625_v50 = vadd.f32 %v1912_v39, %v2909_v9 }
 0x351   : > { %1628 = vst [vmem:[%s352_s20 + $0x10] sm:$0xff] %v1624_v12 }
 0x352   : > { %1629 = vst [vmem:[%s352_s20 + $0x18] sm:$0xff] %v1625_v50 }
 0x353   : > { %2375 = shalt.err (!%p2372_p13)
}
 0x354   : > { %s2376_s15 = scalar_lea.hbm %s2952_s11, 512  ;;  %s2380_s20 = scalar_lea.hbm %s3004_s7, 1024 }
 0x355   : > { %p2377_p9 = scmp.ne.s32.totalorder %s2952_s11, %s2376_s15  ;;  %p2381_p4 = scmp.lt.u32.totalorder %s2952_s11, %s3004_s7 }
 0x356   : > { %p2382_p8 = scmp.lt.u32.totalorder %s2380_s20, %s2376_s15  ;;  %p2384_p10 = scmp.lt.u32.totalorder %s2376_s15, %s2952_s11 }
 0x357   : > { %p2378_p0 = pnand %p2377_p9, %p2660_p3 }
 0x358   : > { %p2383_p6 = por %p2382_p8, %p2381_p4 }
 0x359   : > { %p2379_p11 = pneg %p2378_p0 }
 0x35a   : > { %p2385_p5 = por %p2384_p10, %p2383_p6 }
 0x35c   : > { %p2386_p7 = pnand %p2385_p5, %p2379_p11 }
 0x35e   : > { %2389 = shalt.err (!%p2386_p7)
}
 0x35f   : > { %s2451_s16 = smov 256  }
 0x360   : > { %1935 = dma.vmem_to_hbm [thread:$0]  (%p2660_p3), %s2945_s12, 512, %s2952_s11, %s1631_s28, %s2451_s16, %s2451_s16, %s2448_s30  }
 0x361 PF: > { %s3024_s22 = sld [smem:[#allocation16_spill]]  ;;  %s1659_s17 = sand.u32 1, %s2424_s24  }
 0x362   : > { %p3026_p1 = scmp.ge.s32.totalorder %s2436_s27, 2  ;;  %s1660_s9 = scalar_lea.sflag [#allocation4], %s1659_s17 }
 0x367   : > { %p3025_p12 = scmp.ne.s32.totalorder %s3024_s22, 0 }
 0x369   : > { %p1955_p2 = pnand %p3026_p1, %p3025_p12 }
 0x36b   : > { %2419 = dma.done.wait (!%p1955_p2), %s1660_s9, 512  }
 0x36c   : > { %2421 = vsyncadd (!%p1955_p2), %s1660_s9, 4294966784  ;;  %p22_p13 = scmp.ge.s32.totalorder %s2647_s19, 4   ;;  %s3027_s24 = smov %s2428_s25 }
 0x36d   : > { %s3028_s25 = smov %s2432_s26  ;;  %s3029_s26 = smov %s2656_s23 }
 0x36e   : > { %s3030_s27 = smov %s2647_s19  ;;  %24 = sbr.rel (!%p22_p13) target bundleno = 7 (0x7), region = 117 }
 0x375   :  { %1665 = vsyncpa [#allocation3], 1 }
 0x376   :  { %1667 = vsyncpa [#allocation3 + $0x1], 1 }
 0x377   :  { %1668 = vsyncpa [#allocation6], 1 }
 0x378   :  { %1669 = vsyncpa [#allocation9], 1 }
 0x379   :  { %1670 = vsyncpa [#allocation4], 1 }
 0x37a   :  { %1672 = vsyncpa [#allocation4 + $0x1], 1 }

</bundles_post_ra>
